<compile_context>
chip_gen: v7x
topology: tpu7x:2x2x1
jax: 0.10.0
libtpu: 0.0.40
codegen_flags: <defaults>
</compile_context>

<pallas_src>
import functools

import jax
import jax.numpy as jnp
from jax import lax
from jax.experimental import pallas as pl
from jax.experimental.pallas import tpu as pltpu


def _round_up(n, m):
    return (n + m - 1) // m * m


def _choose_tile_h(H, W, C1, p, kkc1, t_c2, bytes_in, bytes_out,
                   budget=16 * 2 ** 20):
    """Largest row tile that divides H, respects the halo granularity and keeps
    the per-step VMEM footprint (double-buffered blocks + im2col scratch) within
    a conservative budget (safe for v7x's 64 MiB VMEM)."""
    candidates = [d for d in range(H, 0, -1)
                  if H % d == 0 and (p == 0 or d % p == 0)]
    for t_h in candidates:
        foot = (2 * (t_h + 2 * p) * W * C1 * bytes_in      # x strip (double buffered)
                + 2 * kkc1 * t_c2 * bytes_in               # weight tile
                + 2 * t_h * W * t_c2 * bytes_out           # output tile
                + t_h * W * kkc1 * bytes_in)               # im2col scratch
        if foot <= budget:
            return t_h
    return candidates[-1]


def _make_conv_kernel(k, p, t_h, width, c1, kkc1):
    """Fused conv + BN(shift) + SiLU kernel body (closure over static sizes)."""
    strip_rows = t_h + 2 * p

    def _build_cols(strip):
        # strip: (strip_rows, W, C1), already zero where the receptive field falls
        # outside the image along H.  Build the im2col matrix (tH*W, k*k*C1) with
        # a single concatenate (one relayout, single matmul afterwards).
        def shift_w(a, dw):
            # out[:, c, :] = a[:, c + dw, :]  (zero where c + dw is outside [0, W))
            if dw == 0:
                return a
            zeros = jnp.zeros((strip_rows, abs(dw), c1), a.dtype)
            if dw > 0:
                return jnp.concatenate([a[:, dw:, :], zeros], axis=1)
            return jnp.concatenate([zeros, a[:, :dw, :]], axis=1)

        shifted = [shift_w(strip, kw - p) for kw in range(k)]
        taps = []
        for kh in range(k):          # order matches the (kh, kw, ci) weight flatten
            for kw in range(k):
                taps.append(shifted[kw][kh:kh + t_h])   # outer-dim slice: no relayout
        cols = taps[0] if len(taps) == 1 else jnp.concatenate(taps, axis=-1)
        return cols.reshape(t_h * width, kkc1)

    def _matmul_epilogue(cols_ref, w_ref, shift_ref, o_ref):
        # Single MXU matmul, contraction = k*k*C1, f32 accumulation.
        acc = jnp.dot(cols_ref[...], w_ref[...],
                      preferred_element_type=jnp.float32)
        # BN scale already folded into w; apply shift + SiLU in f32.
        y = acc + shift_ref[...]
        y = y * jax.nn.sigmoid(y)
        o_ref[0] = y.reshape(t_h, width, -1).astype(o_ref.dtype)

    if p > 0:
        def kernel(top_ref, body_ref, bot_ref, w_ref, shift_ref, o_ref, cols_ref):
            i = pl.program_id(1)
            n_row_tiles = pl.num_programs(1)

            # Rebuild im2col only when the row strip changes (C2 tiles innermost).
            @pl.when(pl.program_id(2) == 0)
            def _():
                top = top_ref[0]     # (p, W, C1)  rows just above the tile
                body = body_ref[0]   # (tH, W, C1)
                bot = bot_ref[0]     # (p, W, C1)  rows just below the tile
                # In-kernel zero padding along H at the image border.
                top = jnp.where(i == 0, jnp.zeros_like(top), top)
                bot = jnp.where(i == n_row_tiles - 1, jnp.zeros_like(bot), bot)
                strip = jnp.concatenate([top, body, bot], axis=0)
                cols_ref[...] = _build_cols(strip)

            _matmul_epilogue(cols_ref, w_ref, shift_ref, o_ref)
    else:
        def kernel(body_ref, w_ref, shift_ref, o_ref, cols_ref):
            @pl.when(pl.program_id(2) == 0)
            def _():
                cols_ref[...] = _build_cols(body_ref[0])

            _matmul_epilogue(cols_ref, w_ref, shift_ref, o_ref)

    return kernel


def conv_bn_silu(x_nchw, w_oihw, gamma, beta, running_mean, running_var, *,
                 k, p=None, eps=1e-3, compute_dtype=jnp.bfloat16,
                 out_dtype=jnp.float32, tile_h=None):
    """Equivalent of Conv(c1, c2, k, s=1, p=autopad(k), g=1, act=SiLU()).forward (eval)."""
    if p is None:
        p = k // 2                                   # autopad
    B, C1, H, W = x_nchw.shape
    C2 = w_oihw.shape[0]
    assert w_oihw.shape == (C2, C1, k, k), "groups != 1 / non-square k not supported"
    assert k % 2 == 1 and p == k // 2, "only stride-1 'same' autopad is supported"

    f32 = jnp.float32
    # ---- BatchNorm (inference) folding: scale goes into the weight, shift stays.
    scale = gamma.astype(f32) / jnp.sqrt(running_var.astype(f32) + eps)   # (C2,)
    shift = beta.astype(f32) - running_mean.astype(f32) * scale           # (C2,)

    # OIHW -> HWIO (scale folded per output channel) -> im2col layout (k*k*C1, C2).
    w = w_oihw.astype(f32) * scale[:, None, None, None]
    w = jnp.transpose(w, (2, 3, 1, 0)).reshape(k * k * C1, C2)

    # Pad C2 to a multiple of 128: lane-dense output stores + full MXU N dim.
    C2p = _round_up(C2, 128)
    if C2p != C2:
        w = jnp.pad(w, ((0, 0), (0, C2p - C2)))
        shift = jnp.pad(shift, (0, C2p - C2))
    w = w.astype(compute_dtype)
    shift = shift.reshape(1, C2p)                     # stays f32 for the epilogue

    # NCHW -> NHWC; bf16 halves HBM/VMEM traffic and feeds the MXU natively.
    x = jnp.transpose(x_nchw, (0, 2, 3, 1)).astype(compute_dtype)

    kkc1 = k * k * C1
    t_c2 = 256 if C2p % 256 == 0 else 128
    n_c2 = C2p // t_c2

    bytes_c = jnp.dtype(compute_dtype).itemsize
    bytes_o = jnp.dtype(out_dtype).itemsize

    if p > 0:
        assert H % p == 0, "row-halo tiling needs p to divide H"
    if tile_h is None:
        tile_h = _choose_tile_h(H, W, C1, p, kkc1, t_c2, bytes_c, bytes_o)
    assert H % tile_h == 0 and (p == 0 or tile_h % p == 0), (H, tile_h, p)
    n_rows = H // tile_h

    kernel = _make_conv_kernel(k, p, tile_h, W, C1, kkc1)

    body_spec = pl.BlockSpec((1, tile_h, W, C1), lambda b, i, c: (b, i, 0, 0))
    w_spec = pl.BlockSpec((kkc1, t_c2), lambda b, i, c: (0, c))
    shift_spec = pl.BlockSpec((1, t_c2), lambda b, i, c: (0, c))
    out_spec = pl.BlockSpec((1, tile_h, W, t_c2), lambda b, i, c: (b, i, 0, c))

    if p > 0:
        hpb = tile_h // p                # row-tile size in units of halo blocks
        n_hb = H // p                    # number of halo blocks along H
        top_spec = pl.BlockSpec(
            (1, p, W, C1),
            lambda b, i, c: (b, jnp.maximum(i * hpb - 1, 0), 0, 0))
        bot_spec = pl.BlockSpec(
            (1, p, W, C1),
            lambda b, i, c: (b, jnp.minimum((i + 1) * hpb, n_hb - 1), 0, 0))
        in_specs = [top_spec, body_spec, bot_spec, w_spec, shift_spec]
        inputs = (x, x, x, w, shift)
    else:
        in_specs = [body_spec, w_spec, shift_spec]
        inputs = (x, w, shift)

    # Explicit VMEM budget (double-buffered blocks + scratch + headroom).
    est = (2 * (tile_h + 2 * p) * W * C1 * bytes_c
           + 2 * kkc1 * t_c2 * bytes_c
           + 2 * t_c2 * 4
           + 2 * tile_h * W * t_c2 * bytes_o
           + tile_h * W * kkc1 * bytes_c)
    vmem_limit = int(max(32 * 2 ** 20, min(48 * 2 ** 20, 4 * est)))

    out_nhwc = pl.pallas_call(
        kernel,
        out_shape=jax.ShapeDtypeStruct((B, H, W, C2p), out_dtype),
        grid_spec=pltpu.PrefetchScalarGridSpec(
            num_scalar_prefetch=0,
            grid=(B, n_rows, n_c2),
            in_specs=in_specs,
            out_specs=out_spec,
            scratch_shapes=[pltpu.VMEM((tile_h * W, kkc1), compute_dtype)],
        ),
        compiler_params=pltpu.CompilerParams(
            dimension_semantics=("parallel", "parallel", "arbitrary"),
            vmem_limit_bytes=vmem_limit,
        ),
    )(*inputs)

    if C2p != C2:
        out_nhwc = out_nhwc[..., :C2]
    # Back to PyTorch's NCHW convention.
    return jnp.transpose(out_nhwc, (0, 3, 1, 2))


def _reference(x_nchw, w_oihw, gamma, beta, mean, var, *, k, eps=1e-3):
    p = k // 2
    y = lax.conv_general_dilated(
        x_nchw.astype(jnp.float32), w_oihw.astype(jnp.float32),
        window_strides=(1, 1), padding=((p, p), (p, p)),
        dimension_numbers=("NCHW", "OIHW", "NCHW"))
    s = gamma / jnp.sqrt(var + eps)
    y = y * s[None, :, None, None] + (beta - mean * s)[None, :, None, None]
    return y * jax.nn.sigmoid(y)


if __name__ == "__main__":
    key = jax.random.PRNGKey(0)
    kx, kw, kg, kb, km, kv, kw1 = jax.random.split(key, 7)

    B, C1, C2, H, W, K = 2, 4, 8, 16, 16, 3

    x = jax.random.normal(kx, (B, C1, H, W), jnp.float32)
    w = jax.random.normal(kw, (C2, C1, K, K), jnp.float32) * 0.1    # Conv2d weight, bias=False
    gamma = jax.random.normal(kg, (C2,), jnp.float32) * 0.1 + 1.0   # BN weight
    beta = jax.random.normal(kb, (C2,), jnp.float32) * 0.1          # BN bias
    running_mean = jax.random.normal(km, (C2,), jnp.float32) * 0.1
    running_var = jax.random.uniform(kv, (C2,), jnp.float32, 0.5, 1.5)

    ref = _reference(x, w, gamma, beta, running_mean, running_var, k=K, eps=1e-3)

    # 3x3 conv, f32 compute path (tight tolerance; exercises 2 row tiles + halos).
    fn32 = jax.jit(functools.partial(conv_bn_silu, k=K, eps=1e-3,
                                     compute_dtype=jnp.float32, tile_h=8))
    out32 = jax.block_until_ready(fn32(x, w, gamma, beta, running_mean, running_var))
    assert out32.shape == (B, C2, H, W), out32.shape
    assert jnp.allclose(out32, ref, atol=1e-4, rtol=1e-4), \
        float(jnp.max(jnp.abs(out32 - ref)))

    # 3x3 conv, default bf16 MXU path (looser tolerance for bf16 inputs).
    fnbf = jax.jit(functools.partial(conv_bn_silu, k=K, eps=1e-3, tile_h=8))
    outbf = jax.block_until_ready(fnbf(x, w, gamma, beta, running_mean, running_var))
    assert outbf.shape == (B, C2, H, W), outbf.shape
    assert jnp.allclose(outbf, ref, atol=5e-2, rtol=5e-2), \
        float(jnp.max(jnp.abs(outbf - ref)))

    # 1x1 conv (module default k=1): exercises the p == 0 path.
    w1 = jax.random.normal(kw1, (C2, C1, 1, 1), jnp.float32) * 0.1
    ref1 = _reference(x, w1, gamma, beta, running_mean, running_var, k=1, eps=1e-3)
    fn1 = jax.jit(functools.partial(conv_bn_silu, k=1, eps=1e-3,
                                    compute_dtype=jnp.float32))
    out1 = jax.block_until_ready(fn1(x, w1, gamma, beta, running_mean, running_var))
    assert jnp.allclose(out1, ref1, atol=1e-4, rtol=1e-4), \
        float(jnp.max(jnp.abs(out1 - ref1)))

    print("KERNEL_OK")
</pallas_src>

<mosaic_0001>
module attributes {stable_mosaic.version = 11 : i64} {
  func.func @kernel(%arg0: i32, %arg1: i32, %arg2: i32, %arg3: memref<1x1x16x4xf32, #tpu.memory_space<vmem>>, %arg4: memref<1x8x16x4xf32, #tpu.memory_space<vmem>>, %arg5: memref<1x1x16x4xf32, #tpu.memory_space<vmem>>, %arg6: memref<36x128xf32, #tpu.memory_space<vmem>>, %arg7: memref<1x128xf32, #tpu.memory_space<vmem>>, %arg8: memref<1x8x16x128xf32, #tpu.memory_space<vmem>>, %arg9: memref<128x36xf32, #tpu.memory_space<vmem>>) attributes {dimension_semantics = [#tpu.dimension_semantics<parallel>, #tpu.dimension_semantics<parallel>, #tpu.dimension_semantics<arbitrary>], iteration_bounds = array<i64: 2, 2, 1>, scalar_prefetch = 0 : i64, scratch_operands = 1 : i64, tpu.core_type = #tpu.core_type<tc>, window_params = [{transform_indices = @transform_0, window_bounds = array<i64: 1, 1, 16, 4>}, {transform_indices = @transform_1, window_bounds = array<i64: 1, 8, 16, 4>}, {transform_indices = @transform_2, window_bounds = array<i64: 1, 1, 16, 4>}, {transform_indices = @transform_3, window_bounds = array<i64: 36, 128>}, {transform_indices = @transform_4, window_bounds = array<i64: 1, 128>}, {transform_indices = @transform_5, window_bounds = array<i64: 1, 8, 16, 128>}]} {
    %c0_i32 = arith.constant 0 : i32
    %0 = arith.cmpi eq, %arg2, %c0_i32 : i32
    %1 = arith.extui %0 : i1 to i32
    %c0_i32_0 = arith.constant 0 : i32
    %2 = arith.cmpi ne, %1, %c0_i32_0 : i32
    scf.if %2 {
      %c0_11 = arith.constant 0 : index
      %c0_12 = arith.constant 0 : index
      %c0_13 = arith.constant 0 : index
      %c0_14 = arith.constant 0 : index
      %19 = vector.load %arg3[%c0_11, %c0_12, %c0_13, %c0_14] : memref<1x1x16x4xf32, #tpu.memory_space<vmem>>, vector<1x1x16x4xf32>
      %20 = vector.shape_cast %19 : vector<1x1x16x4xf32> to vector<1x16x4xf32>
      %c0_15 = arith.constant 0 : index
      %c0_16 = arith.constant 0 : index
      %c0_17 = arith.constant 0 : index
      %c0_18 = arith.constant 0 : index
      %21 = vector.load %arg4[%c0_15, %c0_16, %c0_17, %c0_18] : memref<1x8x16x4xf32, #tpu.memory_space<vmem>>, vector<1x8x16x4xf32>
      %22 = vector.shape_cast %21 : vector<1x8x16x4xf32> to vector<8x16x4xf32>
      %c0_19 = arith.constant 0 : index
      %c0_20 = arith.constant 0 : index
      %c0_21 = arith.constant 0 : index
      %c0_22 = arith.constant 0 : index
      %23 = vector.load %arg5[%c0_19, %c0_20, %c0_21, %c0_22] : memref<1x1x16x4xf32, #tpu.memory_space<vmem>>, vector<1x1x16x4xf32>
      %24 = vector.shape_cast %23 : vector<1x1x16x4xf32> to vector<1x16x4xf32>
      %c0_i32_23 = arith.constant 0 : i32
      %25 = arith.cmpi eq, %arg1, %c0_i32_23 : i32
      %cst_24 = arith.constant 0.000000e+00 : f32
      %26 = vector.broadcast %cst_24 : f32 to vector<1x16x4xf32>
      %27 = arith.select %25, %26, %20 : vector<1x16x4xf32>
      %c1_i32 = arith.constant 1 : i32
      %28 = arith.cmpi eq, %arg1, %c1_i32 : i32
      %cst_25 = arith.constant 0.000000e+00 : f32
      %29 = vector.broadcast %cst_25 : f32 to vector<1x16x4xf32>
      %30 = arith.select %28, %29, %24 : vector<1x16x4xf32>
      %31 = tpu.concatenate %27, %22, %30 in 0 : vector<1x16x4xf32>, vector<8x16x4xf32>, vector<1x16x4xf32> -> vector<10x16x4xf32>
      %cst_26 = arith.constant 0.000000e+00 : f32
      %32 = vector.broadcast %cst_26 : f32 to vector<10x1x4xf32>
      %33 = vector.extract_strided_slice %31 {offsets = [0, 0, 0], sizes = [10, 15, 4], strides = [1, 1, 1]} : vector<10x16x4xf32> to vector<10x15x4xf32>
      %34 = tpu.concatenate %32, %33 in 1 : vector<10x1x4xf32>, vector<10x15x4xf32> -> vector<10x16x4xf32>
      %cst_27 = arith.constant 0.000000e+00 : f32
      %35 = vector.broadcast %cst_27 : f32 to vector<10x1x4xf32>
      %36 = vector.extract_strided_slice %31 {offsets = [0, 1, 0], sizes = [10, 15, 4], strides = [1, 1, 1]} : vector<10x16x4xf32> to vector<10x15x4xf32>
      %37 = tpu.concatenate %36, %35 in 1 : vector<10x15x4xf32>, vector<10x1x4xf32> -> vector<10x16x4xf32>
      %38 = vector.extract_strided_slice %34 {offsets = [0, 0, 0], sizes = [8, 16, 4], strides = [1, 1, 1]} : vector<10x16x4xf32> to vector<8x16x4xf32>
      %39 = vector.extract_strided_slice %31 {offsets = [0, 0, 0], sizes = [8, 16, 4], strides = [1, 1, 1]} : vector<10x16x4xf32> to vector<8x16x4xf32>
      %40 = vector.extract_strided_slice %37 {offsets = [0, 0, 0], sizes = [8, 16, 4], strides = [1, 1, 1]} : vector<10x16x4xf32> to vector<8x16x4xf32>
      %41 = vector.extract_strided_slice %34 {offsets = [1, 0, 0], sizes = [8, 16, 4], strides = [1, 1, 1]} : vector<10x16x4xf32> to vector<8x16x4xf32>
      %42 = vector.extract_strided_slice %31 {offsets = [1, 0, 0], sizes = [8, 16, 4], strides = [1, 1, 1]} : vector<10x16x4xf32> to vector<8x16x4xf32>
      %43 = vector.extract_strided_slice %37 {offsets = [1, 0, 0], sizes = [8, 16, 4], strides = [1, 1, 1]} : vector<10x16x4xf32> to vector<8x16x4xf32>
      %44 = vector.extract_strided_slice %34 {offsets = [2, 0, 0], sizes = [8, 16, 4], strides = [1, 1, 1]} : vector<10x16x4xf32> to vector<8x16x4xf32>
      %45 = vector.extract_strided_slice %31 {offsets = [2, 0, 0], sizes = [8, 16, 4], strides = [1, 1, 1]} : vector<10x16x4xf32> to vector<8x16x4xf32>
      %46 = vector.extract_strided_slice %37 {offsets = [2, 0, 0], sizes = [8, 16, 4], strides = [1, 1, 1]} : vector<10x16x4xf32> to vector<8x16x4xf32>
      %47 = tpu.concatenate %38, %39, %40, %41, %42, %43, %44, %45, %46 in 2 : vector<8x16x4xf32>, vector<8x16x4xf32>, vector<8x16x4xf32>, vector<8x16x4xf32>, vector<8x16x4xf32>, vector<8x16x4xf32>, vector<8x16x4xf32>, vector<8x16x4xf32>, vector<8x16x4xf32> -> vector<8x16x36xf32>
      %48 = vector.shape_cast %47 : vector<8x16x36xf32> to vector<128x36xf32>
      %c0_28 = arith.constant 0 : index
      %c0_29 = arith.constant 0 : index
      %49 = vector.load %arg9[%c0_28, %c0_29] : memref<128x36xf32, #tpu.memory_space<vmem>>, vector<128x36xf32>
      tpu.vector_store %arg9[%c0_28, %c0_29], %48 {strides = array<i32>} : memref<128x36xf32, #tpu.memory_space<vmem>>, vector<128x36xf32>,
    } else {
    }
    %c0 = arith.constant 0 : index
    %c0_1 = arith.constant 0 : index
    %3 = vector.load %arg9[%c0, %c0_1] : memref<128x36xf32, #tpu.memory_space<vmem>>, vector<128x36xf32>
    %c0_2 = arith.constant 0 : index
    %c0_3 = arith.constant 0 : index
    %4 = vector.load %arg6[%c0_2, %c0_3] : memref<36x128xf32, #tpu.memory_space<vmem>>, vector<36x128xf32>
    %cst = arith.constant dense<0.000000e+00> : vector<128x128xf32>
    %5 = tpu.matmul %3, %4, %cst {dimension_numbers = #tpu.dot_dimension_numbers<[1], [0], [0], [1], [0, 0, 1, 1], [], []>} : vector<128x36xf32>, vector<36x128xf32>, vector<128x128xf32> -> vector<128x128xf32>
    %c0_4 = arith.constant 0 : index
    %c0_5 = arith.constant 0 : index
    %6 = vector.load %arg7[%c0_4, %c0_5] : memref<1x128xf32, #tpu.memory_space<vmem>>, vector<1x128xf32>
    %7 = vector.broadcast %6 : vector<1x128xf32> to vector<128x128xf32>
    %8 = arith.addf %5, %7 : vector<128x128xf32>
    %9 = arith.negf %8 : vector<128x128xf32>
    %10 = math.exp %9 : vector<128x128xf32>
    %cst_6 = arith.constant 1.000000e+00 : f32
    %11 = vector.broadcast %cst_6 : f32 to vector<128x128xf32>
    %12 = arith.addf %11, %10 : vector<128x128xf32>
    %13 = arith.divf %11, %12 : vector<128x128xf32>
    %14 = arith.mulf %8, %13 : vector<128x128xf32>
    %15 = vector.shape_cast %14 : vector<128x128xf32> to vector<8x16x128xf32>
    %c0_7 = arith.constant 0 : index
    %c0_8 = arith.constant 0 : index
    %c0_9 = arith.constant 0 : index
    %c0_10 = arith.constant 0 : index
    %16 = vector.load %arg8[%c0_7, %c0_8, %c0_9, %c0_10] : memref<1x8x16x128xf32, #tpu.memory_space<vmem>>, vector<1x8x16x128xf32>
    %17 = vector.shape_cast %16 : vector<1x8x16x128xf32> to vector<8x16x128xf32>
    %18 = vector.shape_cast %15 : vector<8x16x128xf32> to vector<1x8x16x128xf32>
    tpu.vector_store %arg8[%c0_7, %c0_8, %c0_9, %c0_10], %18 {strides = array<i32>} : memref<1x8x16x128xf32, #tpu.memory_space<vmem>>, vector<1x8x16x128xf32>,
    return
  }
  func.func @transform_0(%arg0: i32, %arg1: i32, %arg2: i32) -> (i32, i32, i32, i32) {
    %c8_i32 = arith.constant 8 : i32
    %0 = arith.muli %arg1, %c8_i32 : i32
    %c1_i32 = arith.constant 1 : i32
    %1 = arith.subi %0, %c1_i32 : i32
    %c0_i32 = arith.constant 0 : i32
    %2 = arith.maxsi %1, %c0_i32 : i32
    %c0_i32_0 = arith.constant 0 : i32
    %c0_i32_1 = arith.constant 0 : i32
    %c0_i32_2 = arith.constant 0 : i32
    return %arg0, %2, %c0_i32_0, %c0_i32_1 : i32, i32, i32, i32
  }
  func.func @transform_1(%arg0: i32, %arg1: i32, %arg2: i32) -> (i32, i32, i32, i32) {
    %c0_i32 = arith.constant 0 : i32
    %c0_i32_0 = arith.constant 0 : i32
    %c0_i32_1 = arith.constant 0 : i32
    return %arg0, %arg1, %c0_i32, %c0_i32_0 : i32, i32, i32, i32
  }
  func.func @transform_2(%arg0: i32, %arg1: i32, %arg2: i32) -> (i32, i32, i32, i32) {
    %c1_i32 = arith.constant 1 : i32
    %0 = arith.addi %arg1, %c1_i32 : i32
    %c8_i32 = arith.constant 8 : i32
    %1 = arith.muli %0, %c8_i32 : i32
    %c15_i32 = arith.constant 15 : i32
    %2 = arith.minsi %1, %c15_i32 : i32
    %c0_i32 = arith.constant 0 : i32
    %c0_i32_0 = arith.constant 0 : i32
    %c0_i32_1 = arith.constant 0 : i32
    return %arg0, %2, %c0_i32, %c0_i32_0 : i32, i32, i32, i32
  }
  func.func @transform_3(%arg0: i32, %arg1: i32, %arg2: i32) -> (i32, i32) {
    %c0_i32 = arith.constant 0 : i32
    %c0_i32_0 = arith.constant 0 : i32
    return %c0_i32, %arg2 : i32, i32
  }
  func.func @transform_4(%arg0: i32, %arg1: i32, %arg2: i32) -> (i32, i32) {
    %c0_i32 = arith.constant 0 : i32
    %c0_i32_0 = arith.constant 0 : i32
    return %c0_i32, %arg2 : i32, i32
  }
  func.func @transform_5(%arg0: i32, %arg1: i32, %arg2: i32) -> (i32, i32, i32, i32) {
    %c0_i32 = arith.constant 0 : i32
    %c0_i32_0 = arith.constant 0 : i32
    return %arg0, %arg1, %c0_i32, %arg2 : i32, i32, i32, i32
  }
}

</mosaic_0001>

<bundles_post_ra>
// kernel: conv_bn_silu.1
= control target key start
LH: loop header
LB: loop body
LE: loop exit
PB: predicated region body
PF: predicated region fallthrough
CT: control target
= control target key end

     0   :  { %s2049_s18 = smov 0   ;;  %s2051_s19 = smov 0   ;;  %s2840_s0 = inlined_call_operand.vmem [shape: f32[2,16,16,4], index: 0, kind: input, shape index: {}, may-alias: {0,1,2}]   ;;  %s2841_s1 = inlined_call_operand.vmem [shape: f32[2,16,16,4], index: 1, kind: input, shape index: {}, may-alias: {0,1,2}]   ;;  %s2842_s2 = inlined_call_operand.vmem [shape: f32[2,16,16,4], index: 2, kind: input, shape index: {}, may-alias: {0,1,2}]   ;;  %s2843_s3 = inlined_call_operand.vmem [shape: f32[36,128], index: 3, kind: input, shape index: {}]   ;;  %s2844_s4 = inlined_call_operand.vmem [shape: f32[1,128], index: 4, kind: input, shape index: {}]   ;;  %s2845_s5 = inlined_call_operand.vmem [shape: f32[2,16,16,128], index: 5, kind: output, shape index: {}]  }
   0x1   :  { %s2053_s20 = smov 0   ;;  %s2055_s21 = smov 0  }
   0x2   :  { %s2057_s22 = smov 0  }
   0x3 LB: > { %s30_s23 = sadd.s32 1, %s2001_s20  ;;  %s34_s24 = sadd.s32 1, %s2005_s21  ;;  %s2009_s22 = sphi %s2057_s22, %s15_s22   ;;  %s2005_s21 = sphi %s2055_s21, %s2890_s21   ;;  %s2001_s20 = sphi %s2053_s20, %s2889_s20   ;;  %s1997_s19 = sphi %s2051_s19, %s2888_s19   ;;  %s1993_s18 = sphi %s2049_s18, %s2887_s18  }
   0x4   : > { %p32_p0 = scmp.ge.s32.totalorder %s30_s23, 2  ;;  %p1708_p1 = scmp.ge.s32.totalorder %s2009_s22, 1 }
   0x5   : > { %p299_p2 = scmp.lt.s32.totalorder %s2009_s22, 5 }
   0x6   : > { %s2892_s23 = smov (%p32_p0, %s30_s23), 0  ;;  %s2894_s24 = smov (!%p32_p0, %s34_s24), %s2005_s21 }
   0x7   : > { %p300_p3 = pnand %p1708_p1, %p299_p2  ;;  %p36_p4 = scmp.ge.s32.totalorder %s2894_s24, 2 }
   0x9   : > { %s2896_s24 = smov (%p36_p4, %s2894_s24), 0  ;;  %303 = sbr.rel (%p300_p3) target bundleno = 648 (0x288), region = 40 }
  0x10   : > { %s2082_s25 = sshll.u32 %s1993_s18, 3  ;;  %p377_p5 = scmp.lt.s32.totalorder %s1997_s19, 1  ;;  %vm554_vm0 = vcmask 1046528   ;;  %vm495_vm1 = vcmask 1040384   ;;  %v1177_v53 = vld [vmem:[%s2843_s3] sm:$0xff]  ;;  %v1178_v54 = vld [vmem:[%s2843_s3 + $0x8] sm:$0xff] }
  0x11   : > { %p393_p6 = scmp.lt.s32.totalorder %s2082_s25, 15  ;;  %s1710_s30 = sadd.s32 4294967295, %s2082_s25  ;;  %v1833_v55 = vpack.c.bf16 %v1178_v54, %v1177_v53  ;;  %v1179_v56 = vld [vmem:[%s2843_s3 + $0x10] sm:$0xff]  ;;  %v1180_v57 = vld [vmem:[%s2843_s3 + $0x18] sm:$0xff]  ;;  %v1181_v59 = vld [vmem:[%s2843_s3 + $0x20] sm:$0xf] }
  0x12   : > { %s2898_s19 = smov (!%p377_p5, %s1997_s19), 1  ;;  %p375_p7 = scmp.gt.s32.totalorder %s1710_s30, 0  ;;  %v1837_v58 = vpack.c.bf16 %v1180_v57, %v1179_v56  ;;  %vm1238_vm2 = vcmask 1043456   ;;  %vm1008_vm3 = vcmask 31744   ;;  %vm1025_vm4 = vcmask 64512  }
  0x13   : > { %s394_s26 = scalar_select %p393_p6, %s2082_s25, 15  ;;  %1834 = vmatprep.subr.bf16.mxu0 %v1833_v55  ;;  %1841 = vmatprep.subr.bf16.mxu1 %v1833_v55  ;;  %vm1042_vm5 = vcmask 97280   ;;  %vm1059_vm6 = vcmask 130048   ;;  %vm1076_vm7 = vcmask 162816   ;;  %vm1093_vm8 = vcmask 195584  }
  0x14   : > { %s2086_s27 = sshll.u32 %s2898_s19, 5  ;;  %p1711_p8 = scmp.lt.s32.totalorder %s1710_s30, 15  ;;  %1836 = vmatpush3.bf16.msra.mxu0 %v1833_v55  ;;  %1844 = vmatpush3.bf16.msra.mxu1 %v1833_v55  ;;  %vm1110_vm9 = vcmask 228352   ;;  %vm1127_vm10 = vcmask 261120   ;;  %vm1144_vm11 = vcmask 293888  }
  0x15   : > { %s1720_s28 = sshll.u32 %s394_s26, 1  ;;  %s2011_s11 = smov 4   ;;  %1838 = vmatprep.subr.bf16.mxu0 %v1837_v58  ;;  %1842 = vmatprep.subr.bf16.mxu1 %v1837_v58 }
  0x16   : > { %s2089_s29 = sadd.s32 %s1720_s28, %s2086_s27  ;;  %p463_p9 = scmp.eq.s32.totalorder %s1993_s18, 0 }
  0x17   : > { %s2846_s6 = sshll.u32 %s2089_s29, 3  ;;  %s2012_s13 = smov 8  }
  0x18   : > { %s2098_s9 = scalar_lea.vmem %s2841_s1, %s2846_s6  ;;  %s2013_s14 = smov 12   ;;  %1840 = vmatpush3.bf16.msra.mxu0 %v1837_v58  ;;  %1845 = vmatpush3.bf16.msra.mxu1 %v1837_v58 }
  0x19   : > { %v2101_v0 = vld [vmem:[%s2098_s9 + $0x38] sm:$0xff]  ;;  %v2104_v1 = vld [vmem:[%s2098_s9 + $0x30] sm:$0xff]  ;;  %v2107_v2 = vld [vmem:[%s2098_s9] sm:$0xff]  ;;  %s376_s10 = scalar_select %p375_p7, %s1710_s30, 0  ;;  %1807 = vmatprep.subr.msk.mxu0 %vm1238_vm2, %v1181_v59  ;;  %1843 = vmatprep.subr.msk.mxu1 %vm1238_vm2, %v1181_v59 }
  0x1a   : > { %623 = vrot.lane.b32.xlu1 %v2101_v0, %s2011_s11  ;;  %621 = vrot.lane.b32.xlu0 %v2104_v1, %s2011_s11  ;;  %v567_v3 = vrot.slane %v2104_v1, 1  ;;  %v568_v4 = vrot.slane %v2101_v0, 1  ;;  %v499_v5 = vrot.slane %v2107_v2, 7  ;;  %v2136_v9 = vld [vmem:[%s2098_s9 + $0x40] sm:$0xff]  ;;  %s1896_s28 = scalar_select %p463_p9, 0, 255 }
  0x1b   : > { %s2900_s10 = smov (!%p1711_p8, %s376_s10), 15  ;;  %2861 = vst [vmem:[#allocation3_spill] sm:$0xff] %v2136_v9  ;;  %v511_v11 = vrot.slane %v2136_v9, 7  ;;  %v2149_v14 = vld [vmem:[%s2098_s9 + $0x48] sm:$0xff]  ;;  %s2014_s30 = smov 16   ;;  %v570_v27 = vrot.slane %v2136_v9, 1 }
  0x1c   : > { %v2119_v6 = vsel %vm554_vm0, %v567_v3, %v568_v4  ;;  %v2122_v7 = vsel %vm495_vm1, 0.0, %v499_v5  ;;  %s1716_s12 = sshll.u32 %s2900_s10, 1  ;;  %v2130_v8 = vsel %vm554_vm0, %v568_v4, 0.0  ;;  %2862 = vst [vmem:[#allocation4_spill] sm:$0xff] %v2149_v14  ;;  %v446_v18 = vld [vmem:[%s2098_s9 + $0x8] sm:$0xff]  ;;  %v512_v21 = vrot.slane %v2149_v14, 7  ;;  %1808 = vmatpush3.msk.msra.mxu0 %vm1238_vm2, %v1181_v59  ;;  %1846 = vmatpush3.msk.msra.mxu1 %vm1238_vm2, %v1181_v59 }
  0x1d   : > { %s383_s15 = sadd.s32 %s2086_s27, %s1716_s12  ;;  %v2156_v20 = vsel %vm495_vm1, 0.0, %v511_v11  ;;  %v500_v24 = vrot.slane %v446_v18, 7  ;;  %v571_v28 = vrot.slane %v2149_v14, 1  ;;  %v558_v29 = vrot.slane %v2107_v2, 1  ;;  %s2015_s7 = smov 20   ;;  %v455_v33 = vld [vmem:[%s2098_s9 + $0x50] sm:$0xff] }
  0x1e   : > { %677 = vrot.lane.b32.xlu1 %v2119_v6, %s2012_s13  ;;  %717 = vrot.lane.b32.xlu0 %v2122_v7, %s2013_s14  ;;  %s1718_s16 = sshll.u32 %s383_s15, 3  ;;  %2863 = vst [vmem:[#allocation5_spill] sm:$0xff] %v2156_v20  ;;  %v2169_v25 = vsel %vm495_vm1, %v511_v11, %v512_v21  ;;  %v559_v30 = vrot.slane %v446_v18, 1  ;;  %v447_v34 = vld [vmem:[%s2098_s9 + $0x10] sm:$0xff]  ;;  %v514_v36 = vrot.slane %v455_v33, 7  ;;  %s2016_s8 = smov 24  }
  0x1f   : > { %s385_s26 = scalar_lea.vmem %s2840_s0, %s1718_s16  ;;  %v2173_v26 = vsel %vm495_vm1, %v499_v5, %v500_v24  ;;  %v2193_v31 = vsel %vm554_vm0, %v570_v27, %v571_v28  ;;  %v2208_v35 = vsel %vm554_vm0, %v571_v28, 0.0  ;;  %v502_v38 = vrot.slane %v447_v34, 7  ;;  %v456_v41 = vld [vmem:[%s2098_s9 + $0x58] sm:$0xff]  ;;  %s2847_s10 = smov 28   ;;  %v457_v62 = vld [vmem:[%s2098_s9 + $0x60] sm:$0xff] }
  0x20   : > { %v2142_v10 = vld [vmem:[%s385_s26] sm:%s1896_s28]  ;;  %v1900_v13 = vld [vmem:[%s385_s26 + $0x8] sm:%s1896_s28]  ;;  %2864 = vst [vmem:[#allocation6_spill] sm:$0xff] %v2193_v31  ;;  %v560_v32 = vsel %vm554_vm0, %v558_v29, %v559_v30  ;;  %2865 = vst [vmem:[#allocation7_spill] sm:$0xff] %v2208_v35  ;;  %v596_v37 = vsel %vm554_vm0, %v559_v30, 0.0  ;;  %v2215_v39 = vsel %vm495_vm1, 0.0, %v514_v36 }
  0x21   : > { %v555_v12 = vrot.slane %v2142_v10, 1  ;;  %v2849_v15 = vrot.slane %v2142_v10, 7  ;;  %v497_v16 = vrot.slane %v1900_v13, 7  ;;  %v556_v17 = vrot.slane %v1900_v13, 1  ;;  %v448_v42 = vld [vmem:[%s2098_s9 + $0x18] sm:$0xff]  ;;  %s2018_s12 = smov 32  }
  0x22   : > { %679 = vrot.lane.b32.xlu1 %v2130_v8, %s2012_s13  ;;  %605 = vrot.lane.b32.xlu0 %v2142_v10, %s2011_s11  ;;  %v2219_v40 = vsel %vm495_vm1, 0.0, %v502_v38  ;;  %v515_v43 = vrot.slane %v456_v41, 7  ;;  %v503_v44 = vrot.slane %v448_v42, 7  ;;  %v573_v47 = vrot.slane %v455_v33, 1  ;;  %p469_p10 = scmp.eq.s32.totalorder %s1993_s18, 1  ;;  %v449_v63 = vld [vmem:[%s2098_s9 + $0x20] sm:$0xff] }
  0x23   : > { %v557_v19 = vsel %vm554_vm0, %v555_v12, %v556_v17  ;;  %v2162_v22 = vsel %vm495_vm1, %v2849_v15, %v497_v16  ;;  %v595_v23 = vsel %vm554_vm0, %v556_v17, 0.0  ;;  %v574_v48 = vrot.slane %v456_v41, 1  ;;  %v458_v17 = vld [vmem:[%s2098_s9 + $0x68] sm:$0xff]  ;;  %s2872_s6 = smov 28  }
  0x24   : > { %v2233_v45 = vsel %vm495_vm1, %v514_v36, %v515_v43  ;;  %v2238_v46 = vsel %vm495_vm1, %v502_v38, %v503_v44  ;;  %v561_v49 = vrot.slane %v447_v34, 1  ;;  %v562_v50 = vrot.slane %v448_v42, 1 }
  0x25   : > { %2866 = vst [vmem:[#allocation8_spill] sm:$0xff] %v2233_v45  ;;  %2867 = vst [vmem:[#allocation9_spill] sm:$0xff] %v2238_v46  ;;  %v575_v51 = vsel %vm554_vm0, %v573_v47, %v574_v48  ;;  %v601_v60 = vsel %vm554_vm0, %v574_v48, 0.0  ;;  %v505_v3 = vrot.slane %v449_v63, 7  ;;  %v564_v44 = vrot.slane %v449_v63, 1 }
  0x26   : > { %607 = vrot.lane.b32.xlu1 %v1900_v13, %s2011_s11  ;;  %661 = vrot.lane.b32.xlu0 %v557_v19, %s2012_s13  ;;  %v563_v52 = vsel %vm554_vm0, %v561_v49, %v562_v50  ;;  %v597_v61 = vsel %vm554_vm0, %v562_v50, 0.0  ;;  %v518_v19 = vrot.slane %v458_v17, 7 }
  0x27   : > { %v2300_v12 = vsel %vm495_vm1, 0.0, %v505_v3 }
  0x28   : > { %2869 = vst [vmem:[#allocation11_spill] sm:$0xff] %v2300_v12 }
  0x2a   : > { %733 = vrot.lane.b32.xlu1 %v2156_v20, %s2013_s14  ;;  %663 = vrot.lane.b32.xlu0 %v595_v23, %s2012_s13 }
  0x2e   : > { %735 = vrot.lane.b32.xlu1 %v2169_v25, %s2013_s14  ;;  %719 = vrot.lane.b32.xlu0 %v2173_v26, %s2013_s14 }
  0x32   : > { %781 = vrot.lane.b32.xlu1 %v2136_v9, %s2014_s30  ;;  %765 = vrot.lane.b32.xlu0 %v2107_v2, %s2014_s30 }
  0x36   : > { %625 = vrot.lane.b32.xlu1 %v2136_v9, %s2011_s11  ;;  %609 = vrot.lane.b32.xlu0 %v2107_v2, %s2011_s11  ;;  %v517_v2 = vrot.slane %v457_v62, 7  ;;  %v2873_v9 = vrot.slane %v2142_v10, 7 }
  0x38   : > { %v2292_v4 = vsel %vm495_vm1, 0.0, %v517_v2  ;;  %v2321_v27 = vsel %vm495_vm1, %v517_v2, %v518_v19  ;;  %v2399_v19 = vld [vmem:[%s2098_s9 + $0x70] sm:$0xff] }
  0x39   : > { %2868 = vst [vmem:[#allocation10_spill] sm:$0xff] %v2292_v4  ;;  %2870 = vst [vmem:[#allocation12_spill] sm:$0xff] %v2321_v27 }
  0x3a   : > { %783 = vrot.lane.b32.xlu1 %v2149_v14, %s2014_s30  ;;  %767 = vrot.lane.b32.xlu0 %v446_v18, %s2014_s30 }
  0x3e   : > { %830 = vrot.lane.b32.xlu1 %v2193_v31, %s2015_s7  ;;  %814 = vrot.lane.b32.xlu0 %v560_v32, %s2015_s7 }
  0x42   : > { %627 = vrot.lane.b32.xlu1 %v2149_v14, %s2011_s11  ;;  %611 = vrot.lane.b32.xlu0 %v446_v18, %s2011_s11  ;;  %v450_v18 = vld [vmem:[%s2098_s9 + $0x28] sm:$0xff] }
  0x43   : > { %v506_v23 = vrot.slane %v450_v18, 7  ;;  %v565_v47 = vrot.slane %v450_v18, 1 }
  0x45   : > { %v2328_v29 = vsel %vm495_vm1, %v505_v3, %v506_v23 }
  0x46   : > { %681 = vrot.lane.b32.xlu1 %v2193_v31, %s2012_s13  ;;  %665 = vrot.lane.b32.xlu0 %v560_v32, %s2012_s13  ;;  %2871 = vst [vmem:[#allocation13_spill] sm:$0xff] %v2328_v29 }
  0x4a   : > { %832 = vrot.lane.b32.xlu1 %v2208_v35, %s2015_s7  ;;  %816 = vrot.lane.b32.xlu0 %v596_v37, %s2015_s7 }
  0x4e   : > { %879 = vrot.lane.b32.xlu1 %v2215_v39, %s2016_s8  ;;  %863 = vrot.lane.b32.xlu0 %v2219_v40, %s2016_s8 }
  0x52   : > { %683 = vrot.lane.b32.xlu1 %v2208_v35, %s2012_s13  ;;  %667 = vrot.lane.b32.xlu0 %v596_v37, %s2012_s13  ;;  %v509_v35 = vrot.slane %v2101_v0, 7 }
  0x56   : > { %737 = vrot.lane.b32.xlu1 %v2215_v39, %s2013_s14  ;;  %721 = vrot.lane.b32.xlu0 %v2219_v40, %s2013_s14 }
  0x5a   : > { %881 = vrot.lane.b32.xlu1 %v2233_v45, %s2016_s8  ;;  %865 = vrot.lane.b32.xlu0 %v2238_v46, %s2016_s8 }
  0x5e   : > { %927 = vrot.lane.b32.xlu1 %v455_v33, %s2847_s10  ;;  %911 = vrot.lane.b32.xlu0 %v447_v34, %s2847_s10 }
  0x62   : > { %739 = vrot.lane.b32.xlu1 %v2233_v45, %s2013_s14  ;;  %723 = vrot.lane.b32.xlu0 %v2238_v46, %s2013_s14 }
  0x66   : > { %785 = vrot.lane.b32.xlu1 %v455_v33, %s2014_s30  ;;  %769 = vrot.lane.b32.xlu0 %v447_v34, %s2014_s30 }
  0x6a   : > { %929 = vrot.lane.b32.xlu1 %v456_v41, %s2847_s10  ;;  %913 = vrot.lane.b32.xlu0 %v448_v42, %s2847_s10 }
  0x6e   : > { %976 = vrot.lane.b32.xlu1 %v575_v51, %s2018_s12  ;;  %960 = vrot.lane.b32.xlu0 %v563_v52, %s2018_s12 }
  0x72   : > { %629 = vrot.lane.b32.xlu1 %v455_v33, %s2011_s11  ;;  %613 = vrot.lane.b32.xlu0 %v447_v34, %s2011_s11 }
  0x76   : > { %787 = vrot.lane.b32.xlu1 %v456_v41, %s2014_s30  ;;  %771 = vrot.lane.b32.xlu0 %v448_v42, %s2014_s30 }
  0x7a   : > { %834 = vrot.lane.b32.xlu1 %v575_v51, %s2015_s7  ;;  %818 = vrot.lane.b32.xlu0 %v563_v52, %s2015_s7 }
  0x7e   : > { %978 = vrot.lane.b32.xlu1 %v601_v60, %s2018_s12  ;;  %962 = vrot.lane.b32.xlu0 %v597_v61, %s2018_s12 }
  0x82   : > { %631 = vrot.lane.b32.xlu1 %v456_v41, %s2011_s11  ;;  %615 = vrot.lane.b32.xlu0 %v448_v42, %s2011_s11  ;;  %v576_v41 = vrot.slane %v457_v62, 1  ;;  %v577_v42 = vrot.slane %v458_v17, 1 }
  0x84   : > { %v578_v49 = vsel %vm554_vm0, %v576_v41, %v577_v42  ;;  %v602_v59 = vsel %vm554_vm0, %v577_v42, 0.0  ;;  %v520_v41 = vrot.slane %v2399_v19, 7 }
  0x86   : > { %685 = vrot.lane.b32.xlu1 %v575_v51, %s2012_s13  ;;  %669 = vrot.lane.b32.xlu0 %v563_v52, %s2012_s13  ;;  %v566_v51 = vsel %vm554_vm0, %v564_v44, %v565_v47 }
  0x8a   : > { %836 = vrot.lane.b32.xlu1 %v601_v60, %s2015_s7  ;;  %820 = vrot.lane.b32.xlu0 %v597_v61, %s2015_s7 }
  0x8c   : > { %v2295_v5 = vpop.permute.xlu1 %623  ;;  %v2297_v11 = vpop.permute.xlu0 %621 }
  0x8e   : > { %883 = vrot.lane.b32.xlu1 %v2292_v4, %s2016_s8  ;;  %867 = vrot.lane.b32.xlu0 %v2300_v12, %s2016_s8 }
  0x90   : > { %v2306_v13 = vpop.permute.xlu1 %677  ;;  %v2308_v16 = vpop.permute.xlu0 %717 }
  0x92   : > { %687 = vrot.lane.b32.xlu1 %v601_v60, %s2012_s13  ;;  %671 = vrot.lane.b32.xlu0 %v597_v61, %s2012_s13  ;;  %v598_v61 = vsel %vm554_vm0, %v565_v47, 0.0 }
  0x94   : > { %v2314_v21 = vpop.permute.xlu1 %679  ;;  %v2316_v24 = vpop.permute.xlu0 %605 }
  0x96   : > { %741 = vrot.lane.b32.xlu1 %v2292_v4, %s2013_s14  ;;  %725 = vrot.lane.b32.xlu0 %v2300_v12, %s2013_s14 }
  0x98   : > { %v2325_v28 = vpop.permute.xlu1 %607  ;;  %v2330_v30 = vpop.permute.xlu0 %661 }
  0x9a   : > { %885 = vrot.lane.b32.xlu1 %v2321_v27, %s2016_s8  ;;  %869 = vrot.lane.b32.xlu0 %v2328_v29, %s2016_s8 }
  0x9c   : > { %v2336_v32 = vpop.permute.xlu1 %733  ;;  %v2338_v33 = vpop.permute.xlu0 %663 }
  0x9e   : > { %931 = vrot.lane.b32.xlu1 %v457_v62, %s2872_s6  ;;  %915 = vrot.lane.b32.xlu0 %v449_v63, %s2872_s6 }
  0xa0   : > { %v2342_v34 = vpop.permute.xlu1 %735  ;;  %v2344_v36 = vpop.permute.xlu0 %719 }
  0xa2   : > { %743 = vrot.lane.b32.xlu1 %v2321_v27, %s2013_s14  ;;  %727 = vrot.lane.b32.xlu0 %v2328_v29, %s2013_s14  ;;  %v2418_v29 = vld [vmem:[%s2098_s9 + $0x78] sm:$0xff]  ;;  %s1777_s9 = sadd.s32 8, %s2082_s25 }
  0xa3   : > { %v521_v12 = vrot.slane %v2418_v29, 7  ;;  %p2484_p11 = scmp.lt.s32.totalorder %s1777_s9, 15 }
  0xa4   : > { %v2350_v37 = vpop.permute.xlu1 %781  ;;  %v2352_v38 = vpop.permute.xlu0 %765 }
  0xa5   : > { %v522_v46 = vsel %vm495_vm1, %v520_v41, %v521_v12  ;;  %s2902_s9 = smov (!%p2484_p11, %s1777_s9), 15 }
  0xa6   : > { %789 = vrot.lane.b32.xlu1 %v457_v62, %s2014_s30  ;;  %773 = vrot.lane.b32.xlu0 %v449_v63, %s2014_s30  ;;  %s2904_s9 = smov (!%p2484_p11, %s2902_s9), 15 }
  0xa8   : > { %v626_v43 = vpop.permute.xlu1 %625  ;;  %v2356_v48 = vpop.permute.xlu0 %609 }
  0xa9   : > { %v1019_v31 = vsel %vm1008_vm3, %v2156_v20, %v626_v43  ;;  %v1011_v45 = vsel %vm1008_vm3, %v2122_v7, %v2356_v48 }
  0xaa   : > { %933 = vrot.lane.b32.xlu1 %v458_v17, %s2872_s6  ;;  %917 = vrot.lane.b32.xlu0 %v450_v18, %s2872_s6 }
  0xac   : > { %v2361_v50 = vpop.permute.xlu1 %783  ;;  %v2364_v52 = vpop.permute.xlu0 %767 }
  0xae   : > { %980 = vrot.lane.b32.xlu1 %v578_v49, %s2018_s12  ;;  %964 = vrot.lane.b32.xlu0 %v566_v51, %s2018_s12 }
  0xb0   : > { %v2368_v53 = vpop.permute.xlu1 %830  ;;  %v2370_v54 = vpop.permute.xlu0 %814 }
  0xb2   : > { %633 = vrot.lane.b32.xlu1 %v457_v62, %s2011_s11  ;;  %617 = vrot.lane.b32.xlu0 %v449_v63, %s2011_s11 }
  0xb4   : > { %v2374_v55 = vpop.permute.xlu1 %627  ;;  %v2376_v56 = vpop.permute.xlu0 %611 }
  0xb6   : > { %791 = vrot.lane.b32.xlu1 %v458_v17, %s2014_s30  ;;  %775 = vrot.lane.b32.xlu0 %v450_v18, %s2014_s30 }
  0xb8   : > { %v682_v57 = vpop.permute.xlu1 %681  ;;  %v666_v58 = vpop.permute.xlu0 %665 }
  0xba   : > { %838 = vrot.lane.b32.xlu1 %v578_v49, %s2015_s7  ;;  %822 = vrot.lane.b32.xlu0 %v566_v51, %s2015_s7 }
  0xbc   : > { %v2383_v60 = vpop.permute.xlu1 %832  ;;  %v2386_v62 = vpop.permute.xlu0 %816 }
  0xbe   : > { %982 = vrot.lane.b32.xlu1 %v602_v59, %s2018_s12  ;;  %966 = vrot.lane.b32.xlu0 %v598_v61, %s2018_s12 }
  0xc0   : > { %v2390_v63 = vpop.permute.xlu1 %879  ;;  %v2392_v2 = vpop.permute.xlu0 %863 }
  0xc2   : > { %635 = vrot.lane.b32.xlu1 %v458_v17, %s2011_s11  ;;  %619 = vrot.lane.b32.xlu0 %v450_v18, %s2011_s11  ;;  %v508_v17 = vrot.slane %v2104_v1, 7  ;;  %v552_v18 = vsel %vm495_vm1, 0.0, %v520_v41  ;;  %s1727_s11 = sshll.u32 %s2904_s9, 1 }
  0xc4   : > { %v2396_v3 = vpop.permute.xlu1 %683  ;;  %v2401_v23 = vpop.permute.xlu0 %667 }
  0xc6   : > { %689 = vrot.lane.b32.xlu1 %v578_v49, %s2012_s13  ;;  %673 = vrot.lane.b32.xlu0 %v566_v51, %s2012_s13  ;;  %v548_v49 = vsel %vm495_vm1, 0.0, %v508_v17 }
  0xc8   : > { %v738_v42 = vpop.permute.xlu1 %737  ;;  %v722_v44 = vpop.permute.xlu0 %721 }
  0xca   : > { %840 = vrot.lane.b32.xlu1 %v602_v59, %s2015_s7  ;;  %824 = vrot.lane.b32.xlu0 %v598_v61, %s2015_s7 }
  0xcc   : > { %v2410_v47 = vpop.permute.xlu1 %881  ;;  %v2412_v15 = vpop.permute.xlu0 %865 }
  0xce   : > { %887 = vrot.lane.b32.xlu1 %v552_v18, %s2016_s8  ;;  %871 = vrot.lane.b32.xlu0 %v548_v49, %s2016_s8 }
  0xd0   : > { %v928_v51 = vpop.permute.xlu1 %927  ;;  %v912_v27 = vpop.permute.xlu0 %911 }
  0xd2   : > { %691 = vrot.lane.b32.xlu1 %v602_v59, %s2012_s13  ;;  %675 = vrot.lane.b32.xlu0 %v598_v61, %s2012_s13  ;;  %v544_v59 = vsel %vm495_vm1, 0.0, %v2873_v9  ;;  %v1036_v61 = vsel %vm1025_vm4, %v1019_v31, %v682_v57  ;;  %v510_v9 = vsel %vm495_vm1, %v508_v17, %v509_v35  ;;  %v1017_v31 = vsel %vm1008_vm3, %v548_v49, %v2297_v11  ;;  %s411_s13 = sadd.s32 %s1727_s11, %s2086_s27 }
  0xd3   : > { %v1053_v43 = vsel %vm1042_vm5, %v1036_v61, %v738_v42  ;;  %v1009_v12 = vsel %vm1008_vm3, %v544_v59, %v2316_v24  ;;  %v1012_v59 = vsel %vm1008_vm3, %v2173_v26, %v2376_v56  ;;  %s1729_s27 = sshll.u32 %s411_s13, 3 }
  0xd4   : > { %v2423_v4 = vpop.permute.xlu1 %739  ;;  %v2428_v14 = vpop.permute.xlu0 %723  ;;  %s413_s19 = scalar_lea.vmem %s2842_s2, %s1729_s27 }
  0xd6   : > { %745 = vrot.lane.b32.xlu1 %v552_v18, %s2013_s14  ;;  %729 = vrot.lane.b32.xlu0 %v548_v49, %s2013_s14  ;;  %v1028_v18 = vsel %vm1025_vm4, %v1011_v45, %v666_v58  ;;  %v1034_v45 = vsel %vm1025_vm4, %v1017_v31, %v2306_v13  ;;  %v579_v49 = vrot.slane %v2399_v19, 1 }
  0xd7   : > { %v1045_v7 = vsel %vm1042_vm5, %v1028_v18, %v722_v44  ;;  %v1051_v11 = vsel %vm1042_vm5, %v1034_v45, %v2336_v32  ;;  %v1018_v18 = vsel %vm1008_vm3, %v510_v9, %v2295_v5 }
  0xd8   : > { %v786_v20 = vpop.permute.xlu1 %785  ;;  %v770_v48 = vpop.permute.xlu0 %769  ;;  %v1068_v57 = vsel %vm1059_vm6, %v1051_v11, %v2350_v37 }
  0xd9   : > { %v2443_v10 = vsel %vm1059_vm6, %v1053_v43, %v786_v20  ;;  %v1026_v20 = vsel %vm1025_vm4, %v1009_v12, %v2330_v30  ;;  %v2457_v35 = vsel %vm1059_vm6, %v1045_v7, %v770_v48  ;;  %v1085_v30 = vsel %vm1076_vm7, %v1068_v57, %v2368_v53 }
  0xda   : > { %889 = vrot.lane.b32.xlu1 %v522_v46, %s2016_s8  ;;  %873 = vrot.lane.b32.xlu0 %v510_v9, %s2016_s8  ;;  %v1043_v13 = vsel %vm1042_vm5, %v1026_v20, %v2308_v16  ;;  %v1102_v37 = vsel %vm1093_vm8, %v1085_v30, %v2390_v63 }
  0xdb   : > { %v1060_v32 = vsel %vm1059_vm6, %v1043_v13, %v2352_v38  ;;  %v1119_v16 = vsel %vm1110_vm9, %v1102_v37, %v928_v51  ;;  %v580_v51 = vrot.slane %v2418_v29, 1 }
  0xdc   : > { %v2462_v24 = vpop.permute.xlu1 %929  ;;  %v2471_v58 = vpop.permute.xlu0 %913  ;;  %v1077_v41 = vsel %vm1076_vm7, %v1060_v32, %v2370_v54 }
  0xdd   : > { %v1094_v38 = vsel %vm1093_vm8, %v1077_v41, %v2392_v2  ;;  %v581_v31 = vsel %vm554_vm0, %v579_v49, %v580_v51 }
  0xde   : > { %935 = vrot.lane.b32.xlu1 %v2399_v19, %s2872_s6  ;;  %919 = vrot.lane.b32.xlu0 %v2104_v1, %s2872_s6  ;;  %v1111_v42 = vsel %vm1110_vm9, %v1094_v38, %v912_v27  ;;  %v1020_v27 = vsel %vm1008_vm3, %v2169_v25, %v2374_v55 }
  0xe0   : > { %v977_v53 = vpop.permute.xlu1 %976  ;;  %v961_v54 = vpop.permute.xlu0 %960 }
  0xe1   : > { %v1136_v63 = vsel %vm1127_vm10, %v1119_v16, %v977_v53  ;;  %v1128_v44 = vsel %vm1127_vm10, %v1111_v42, %v961_v54  ;;  %v2875_v54 = vld [vmem:[#allocation8_spill] sm:$0xff] }
  0xe2   : > { %1153 = vst.msk [vmem:[#allocation2 + $0x40] sm:$0xff] %vm1144_vm11, %v1136_v63  ;;  %747 = vrot.lane.b32.xlu1 %v522_v46, %s2013_s14  ;;  %1145 = vst.msk [vmem:[#allocation2] sm:$0xff] %vm1144_vm11, %v1128_v44  ;;  %731 = vrot.lane.b32.xlu0 %v510_v9, %s2013_s14  ;;  %v1037_v46 = vsel %vm1025_vm4, %v1020_v27, %v2396_v3  ;;  %v1029_v3 = vsel %vm1025_vm4, %v1012_v59, %v2401_v23  ;;  %s1902_s14 = scalar_select %p469_p10, 0, 255 }
  0xe3   : > { %v1054_v61 = vsel %vm1042_vm5, %v1037_v46, %v2423_v4  ;;  %v1046_v26 = vsel %vm1042_vm5, %v1029_v3, %v2428_v14  ;;  %v1010_v14 = vsel %vm1008_vm3, %v2162_v22, %v2325_v28  ;;  %v2877_v46 = vld [vmem:[#allocation9_spill] sm:$0xff] }
  0xe4   : > { %v630_v17 = vpop.permute.xlu1 %629  ;;  %v2504_v2 = vpop.permute.xlu0 %613  ;;  %v1027_v9 = vsel %vm1025_vm4, %v1010_v14, %v2338_v33  ;;  %v1903_v57 = vld [vmem:[%s413_s19] sm:%s1902_s14]  ;;  %v1906_v41 = vld [vmem:[%s413_s19 + $0x8] sm:%s1902_s14] }
  0xe5   : > { %v1044_v22 = vsel %vm1042_vm5, %v1027_v9, %v2344_v36  ;;  %v1021_v11 = vsel %vm1008_vm3, %v2215_v39, %v630_v17  ;;  %v1013_v30 = vsel %vm1008_vm3, %v2219_v40, %v2504_v2  ;;  %v523_v37 = vrot.slane %v1903_v57, 7  ;;  %v2876_v17 = vld [vmem:[#allocation5_spill] sm:$0xff]  ;;  %v2880_v9 = vld [vmem:[#allocation6_spill] sm:$0xff] }
  0xe6   : > { %793 = vrot.lane.b32.xlu1 %v2399_v19, %s2014_s30  ;;  %777 = vrot.lane.b32.xlu0 %v2104_v1, %s2014_s30  ;;  %v1035_v1 = vsel %vm1025_vm4, %v1018_v18, %v2314_v21  ;;  %v1061_v7 = vsel %vm1059_vm6, %v1044_v22, %v2364_v52  ;;  %v524_v53 = vrot.slane %v1906_v41, 7  ;;  %v583_v18 = vrot.slane %v1906_v41, 1 }
  0xe7   : > { %v1052_v5 = vsel %vm1042_vm5, %v1035_v1, %v2342_v34  ;;  %v553_v40 = vsel %vm495_vm1, 0.0, %v523_v37 }
  0xe8   : > { %v788_v55 = vpop.permute.xlu1 %787  ;;  %v772_v4 = vpop.permute.xlu0 %771  ;;  %v1069_v12 = vsel %vm1059_vm6, %v1052_v5, %v2361_v50  ;;  %v1078_v50 = vsel %vm1076_vm7, %v1061_v7, %v2386_v62  ;;  %v525_v42 = vsel %vm495_vm1, %v523_v37, %v524_v53  ;;  %v604_v5 = vsel %vm554_vm0, %v583_v18, 0.0 }
  0xe9   : > { %v2525_v19 = vsel %vm1059_vm6, %v1054_v61, %v788_v55  ;;  %v1169_v43 = vld [vmem:[#allocation2 + $0x40] sm:$0xff]  ;;  %v2537_v56 = vsel %vm1059_vm6, %v1046_v26, %v772_v4  ;;  %v1086_v28 = vsel %vm1076_vm7, %v1069_v12, %v2383_v60  ;;  %v1095_v48 = vsel %vm1093_vm8, %v1078_v50, %v2412_v15 }
  0xea   : > { %937 = vrot.lane.b32.xlu1 %v2418_v29, %s2872_s6  ;;  %1821 = vmatprep.mubr.msk.f32.mxu1 %vm1144_vm11, %v1169_v43  ;;  %v1161_v23 = vld [vmem:[#allocation2] sm:$0xff]  ;;  %v1103_v33 = vsel %vm1093_vm8, %v1086_v28, %v2410_v47  ;;  %v1112_v52 = vsel %vm1110_vm9, %v1095_v48, %v2471_v58  ;;  %v582_v43 = vrot.slane %v1903_v57, 1 }
  0xeb   : > { %921 = vrot.lane.b32.xlu0 %v2101_v0, %s2872_s6  ;;  %1809 = vmatprep.mubr.msk.f32.mxu0 %vm1144_vm11, %v1161_v23  ;;  %v1120_v36 = vsel %vm1110_vm9, %v1103_v33, %v2462_v24  ;;  %v2878_v26 = vld [vmem:[#allocation3_spill] sm:$0xff] }
  0xec   : > { %v2548_v21 = vpop.permute.xlu1 %834  ;;  %v2558_v34 = vpop.permute.xlu0 %818  ;;  %v584_v23 = vsel %vm554_vm0, %v582_v43, %v583_v18  ;;  %v2881_v33 = vld [vmem:[#allocation7_spill] sm:$0xff] }
  0xee   : > { %984 = vrot.lane.b32.xlu1 %v581_v31, %s2018_s12 }
  0xef   : > { %968 = vrot.lane.b32.xlu0 %v2119_v6, %s2018_s12 }
  0xf0   : > { %v979_v60 = vpop.permute.xlu1 %978  ;;  %v963_v47 = vpop.permute.xlu0 %962 }
  0xf1   : > { %v1137_v45 = vsel %vm1127_vm10, %v1120_v36, %v979_v60  ;;  %v1129_v62 = vsel %vm1127_vm10, %v1112_v52, %v963_v47  ;;  %v1087_v52 = vsel %vm1076_vm7, %v2443_v10, %v2548_v21 }
  0xf2   : > { %1154 = vst.msk [vmem:[#allocation2 + $0x48] sm:$0xff] %vm1144_vm11, %v1137_v45  ;;  %795 = vrot.lane.b32.xlu1 %v2418_v29, %s2014_s30  ;;  %1146 = vst.msk [vmem:[#allocation2 + $0x8] sm:$0xff] %vm1144_vm11, %v1129_v62  ;;  %v603_v29 = vsel %vm554_vm0, %v580_v51, 0.0 }
  0xf3   : > { %779 = vrot.lane.b32.xlu0 %v2101_v0, %s2014_s30 }
  0xf4   : > { %v632_v15 = vpop.permute.xlu1 %631  ;;  %v616_v20 = vpop.permute.xlu0 %615 }
  0xf5   : > { %v1022_v44 = vsel %vm1008_vm3, %v2875_v54, %v632_v15  ;;  %v1014_v49 = vsel %vm1008_vm3, %v2877_v46, %v616_v20  ;;  %v1079_v15 = vsel %vm1076_vm7, %v2457_v35, %v2558_v34 }
  0xf6   : > { %842 = vrot.lane.b32.xlu1 %v581_v31, %s2015_s7 }
  0xf7   : > { %826 = vrot.lane.b32.xlu0 %v2119_v6, %s2015_s7 }
  0xf8   : > { %v686_v24 = vpop.permute.xlu1 %685  ;;  %v670_v58 = vpop.permute.xlu0 %669 }
  0xf9   : > { %v1038_v0 = vsel %vm1025_vm4, %v1021_v11, %v686_v24  ;;  %v1170_v13 = vld [vmem:[#allocation2 + $0x48] sm:$0xff]  ;;  %v1030_v32 = vsel %vm1025_vm4, %v1013_v30, %v670_v58 }
  0xfa   : > { %986 = vrot.lane.b32.xlu1 %v603_v29, %s2018_s12  ;;  %1822 = vmatmul.mubr.msk.f32.vlgmr.msra.gmra.mrb[0].mxu1 %vm1144_vm11, %v1170_v13  ;;  %v1162_v39 = vld [vmem:[#allocation2 + $0x8] sm:$0xff] }
  0xfb   : > { %970 = vrot.lane.b32.xlu0 %v2130_v8, %s2018_s12  ;;  %1810 = vmatmul.mubr.msk.f32.vlgmr.msra.gmra.mrb[0].mxu0 %vm1144_vm11, %v1162_v39 }
  0xfc   : > { %v2605_v6 = vpop.permute.xlu1 %836  ;;  %v2607_v16 = vpop.permute.xlu0 %820 }
  0xfe   : > { %844 = vrot.lane.b32.xlu1 %v603_v29, %s2015_s7 }
  0xff   : > { %828 = vrot.lane.b32.xlu0 %v2130_v8, %s2015_s7  ;;  %s2886_s7 = sshll.u32 %s2089_s29, 3 }
 0x100   : > { %v884_v38 = vpop.permute.xlu1 %883  ;;  %v868_v63 = vpop.permute.xlu0 %867  ;;  %s2795_s26 = scalar_lea.vmem %s2845_s5, %s2886_s7 }
 0x101   : > { %v1104_v62 = vsel %vm1093_vm8, %v1087_v52, %v884_v38  ;;  %v1096_v11 = vsel %vm1093_vm8, %v1079_v15, %v868_v63  ;;  %v1080_v38 = vsel %vm1076_vm7, %v2537_v56, %v2607_v16  ;;  %v2882_v56 = vld [vmem:[#allocation10_spill] sm:$0xff] }
 0x102   : > { %891 = vrot.lane.b32.xlu1 %v553_v40, %s2016_s8 }
 0x103   : > { %875 = vrot.lane.b32.xlu0 %v2876_v17, %s2016_s8 }
 0x104   : > { %v688_v27 = vpop.permute.xlu1 %687  ;;  %v672_v51 = vpop.permute.xlu0 %671 }
 0x105   : > { %v1039_v2 = vsel %vm1025_vm4, %v1022_v44, %v688_v27  ;;  %v1031_v8 = vsel %vm1025_vm4, %v1014_v49, %v672_v51 }
 0x106   : > { %893 = vrot.lane.b32.xlu1 %v525_v42, %s2016_s8 }
 0x107   : > { %877 = vrot.lane.b32.xlu0 %v2169_v25, %s2016_s8  ;;  %v2879_v25 = vld [vmem:[#allocation4_spill] sm:$0xff] }
 0x108   : > { %v742_v59 = vpop.permute.xlu1 %741  ;;  %v726_v55 = vpop.permute.xlu0 %725 }
 0x109   : > { %v1055_v61 = vsel %vm1042_vm5, %v1038_v0, %v742_v59  ;;  %v1047_v3 = vsel %vm1042_vm5, %v1030_v32, %v726_v55 }
 0x10a   : > { %939 = vrot.lane.b32.xlu1 %v1903_v57, %s2872_s6 }
 0x10b   : > { %923 = vrot.lane.b32.xlu0 %v2878_v26, %s2872_s6 }
 0x10c   : > { %v886_v4 = vpop.permute.xlu1 %885  ;;  %v870_v1 = vpop.permute.xlu0 %869 }
 0x10d   : > { %v1097_v54 = vsel %vm1093_vm8, %v1080_v38, %v870_v1 }
 0x10e   : > { %941 = vrot.lane.b32.xlu1 %v1906_v41, %s2872_s6  ;;  %v1088_v41 = vsel %vm1076_vm7, %v2525_v19, %v2605_v6 }
 0x10f   : > { %925 = vrot.lane.b32.xlu0 %v2879_v25, %s2872_s6  ;;  %v1105_v53 = vsel %vm1093_vm8, %v1088_v41, %v886_v4 }
 0x110   : > { %v932_v31 = vpop.permute.xlu1 %931  ;;  %v916_v14 = vpop.permute.xlu0 %915 }
 0x111   : > { %v1121_v20 = vsel %vm1110_vm9, %v1104_v62, %v932_v31  ;;  %v1113_v57 = vsel %vm1110_vm9, %v1096_v11, %v916_v14 }
 0x112   : > { %988 = vrot.lane.b32.xlu1 %v584_v23, %s2018_s12 }
 0x113   : > { %972 = vrot.lane.b32.xlu0 %v2880_v9, %s2018_s12 }
 0x114   : > { %v744_v12 = vpop.permute.xlu1 %743  ;;  %v728_v28 = vpop.permute.xlu0 %727 }
 0x115   : > { %v1056_v22 = vsel %vm1042_vm5, %v1039_v2, %v744_v12  ;;  %v1048_v7 = vsel %vm1042_vm5, %v1031_v8, %v728_v28  ;;  %v2883_v8 = vld [vmem:[#allocation11_spill] sm:$0xff] }
 0x116   : > { %990 = vrot.lane.b32.xlu1 %v604_v5, %s2018_s12 }
 0x117   : > { %974 = vrot.lane.b32.xlu0 %v2881_v33, %s2018_s12 }
 0x118   : > { %v790_v50 = vpop.permute.xlu1 %789  ;;  %v774_v60 = vpop.permute.xlu0 %773 }
 0x119   : > { %v2645_v36 = vsel %vm1059_vm6, %v1055_v61, %v790_v50  ;;  %v2648_v48 = vsel %vm1059_vm6, %v1047_v3, %v774_v60 }
 0x11c   : > { %v934_v45 = vpop.permute.xlu1 %933  ;;  %v918_v47 = vpop.permute.xlu0 %917 }
 0x11d   : > { %v1122_v63 = vsel %vm1110_vm9, %v1105_v53, %v934_v45  ;;  %v1114_v17 = vsel %vm1110_vm9, %v1097_v54, %v918_v47 }
 0x120   : > { %v981_v29 = vpop.permute.xlu1 %980  ;;  %v965_v0 = vpop.permute.xlu0 %964 }
 0x121   : > { %v1138_v24 = vsel %vm1127_vm10, %v1121_v20, %v981_v29  ;;  %v1130_v10 = vsel %vm1127_vm10, %v1113_v57, %v965_v0 }
 0x122   : > { %1155 = vst.msk [vmem:[#allocation2 + $0x50] sm:$0xff] %vm1144_vm11, %v1138_v24  ;;  %1147 = vst.msk [vmem:[#allocation2 + $0x10] sm:$0xff] %vm1144_vm11, %v1130_v10 }
 0x124   : > { %v634_v21 = vpop.permute.xlu1 %633  ;;  %v618_v13 = vpop.permute.xlu0 %617 }
 0x125   : > { %v1023_v16 = vsel %vm1008_vm3, %v2882_v56, %v634_v21  ;;  %v1015_v59 = vsel %vm1008_vm3, %v2883_v8, %v618_v13 }
 0x128   : > { %v792_v30 = vpop.permute.xlu1 %791  ;;  %v776_v58 = vpop.permute.xlu0 %775 }
 0x129   : > { %v2665_v35 = vsel %vm1059_vm6, %v1056_v22, %v792_v30  ;;  %v1171_v34 = vld [vmem:[#allocation2 + $0x50] sm:$0xff]  ;;  %v2669_v32 = vsel %vm1059_vm6, %v1048_v7, %v776_v58 }
 0x12a   : > { %1824 = vmatprep.mubr.msk.f32.mxu1 %vm1144_vm11, %v1171_v34  ;;  %v1163_v39 = vld [vmem:[#allocation2 + $0x10] sm:$0xff] }
 0x12b   : > { %1812 = vmatprep.mubr.msk.f32.mxu0 %vm1144_vm11, %v1163_v39 }
 0x12c   : > { %v839_v37 = vpop.permute.xlu1 %838  ;;  %v823_v40 = vpop.permute.xlu0 %822 }
 0x12d   : > { %v1089_v60 = vsel %vm1076_vm7, %v2645_v36, %v839_v37  ;;  %v1081_v47 = vsel %vm1076_vm7, %v2648_v48, %v823_v40 }
 0x130   : > { %v983_v42 = vpop.permute.xlu1 %982  ;;  %v967_v27 = vpop.permute.xlu0 %966 }
 0x131   : > { %v1139_v44 = vsel %vm1127_vm10, %v1122_v63, %v983_v42  ;;  %v1131_v19 = vsel %vm1127_vm10, %v1114_v17, %v967_v27 }
 0x132   : > { %1156 = vst.msk [vmem:[#allocation2 + $0x58] sm:$0xff] %vm1144_vm11, %v1139_v44  ;;  %1148 = vst.msk [vmem:[#allocation2 + $0x18] sm:$0xff] %vm1144_vm11, %v1131_v19 }
 0x134   : > { %v2686_v6 = vpop.permute.xlu1 %635  ;;  %v2688_v2 = vpop.permute.xlu0 %619 }
 0x138   : > { %v690_v46 = vpop.permute.xlu1 %689  ;;  %v674_v61 = vpop.permute.xlu0 %673 }
 0x139   : > { %v2693_v49 = vsel %vm1025_vm4, %v1023_v16, %v690_v46  ;;  %v1172_v51 = vld [vmem:[#allocation2 + $0x58] sm:$0xff]  ;;  %v2699_v55 = vsel %vm1025_vm4, %v1015_v59, %v674_v61  ;;  %v2884_v59 = vld [vmem:[#allocation12_spill] sm:$0xff] }
 0x13a   : > { %1825 = vmatmul.mubr.msk.f32.gmra.mrb[2].mxu1 %vm1144_vm11, %v1172_v51  ;;  %v1164_v3 = vld [vmem:[#allocation2 + $0x18] sm:$0xff]  ;;  %v1024_v61 = vsel %vm1008_vm3, %v2884_v59, %v2686_v6 }
 0x13b   : > { %1813 = vmatmul.mubr.msk.f32.gmra.mrb[2].mxu0 %vm1144_vm11, %v1164_v3 }
 0x13c   : > { %v841_v43 = vpop.permute.xlu1 %840  ;;  %v825_v18 = vpop.permute.xlu0 %824 }
 0x13d   : > { %v1090_v21 = vsel %vm1076_vm7, %v2665_v35, %v841_v43  ;;  %v1082_v58 = vsel %vm1076_vm7, %v2669_v32, %v825_v18 }
 0x140   : > { %v888_v26 = vpop.permute.xlu1 %887  ;;  %v872_v4 = vpop.permute.xlu0 %871 }
 0x141   : > { %v1106_v52 = vsel %vm1093_vm8, %v1089_v60, %v888_v26  ;;  %v1098_v20 = vsel %vm1093_vm8, %v1081_v47, %v872_v4 }
 0x144   : > { %v2702_v1 = vpop.permute.xlu1 %691  ;;  %v2704_v23 = vpop.permute.xlu0 %675 }
 0x145   : > { %v1041_v26 = vsel %vm1025_vm4, %v1024_v61, %v2702_v1 }
 0x148   : > { %v746_v25 = vpop.permute.xlu1 %745  ;;  %v730_v31 = vpop.permute.xlu0 %729 }
 0x149   : > { %v1057_v46 = vsel %vm1042_vm5, %v2693_v49, %v746_v25  ;;  %v1049_v3 = vsel %vm1042_vm5, %v2699_v55, %v730_v31  ;;  %v2885_v25 = vld [vmem:[#allocation13_spill] sm:$0xff] }
 0x14c   : > { %v890_v14 = vpop.permute.xlu1 %889  ;;  %v874_v5 = vpop.permute.xlu0 %873 }
 0x14d   : > { %v1107_v30 = vsel %vm1093_vm8, %v1090_v21, %v890_v14  ;;  %v1099_v41 = vsel %vm1093_vm8, %v1082_v58, %v874_v5  ;;  %v1016_v14 = vsel %vm1008_vm3, %v2885_v25, %v2688_v2 }
 0x150   : > { %v936_v9 = vpop.permute.xlu1 %935  ;;  %v920_v12 = vpop.permute.xlu0 %919 }
 0x151   : > { %v1123_v62 = vsel %vm1110_vm9, %v1106_v52, %v936_v9  ;;  %v1115_v11 = vsel %vm1110_vm9, %v1098_v20, %v920_v12  ;;  %v1033_v9 = vsel %vm1025_vm4, %v1016_v14, %v2704_v23 }
 0x154   : > { %v748_v22 = vpop.permute.xlu1 %747  ;;  %v2706_v28 = vpop.permute.xlu0 %731 }
 0x155   : > { %v1058_v5 = vsel %vm1042_vm5, %v1041_v26, %v748_v22 }
 0x158   : > { %v794_v7 = vpop.permute.xlu1 %793  ;;  %v778_v33 = vpop.permute.xlu0 %777 }
 0x159   : > { %v1074_v8 = vsel %vm1059_vm6, %v1057_v46, %v794_v7  ;;  %v1066_v4 = vsel %vm1059_vm6, %v1049_v3, %v778_v33  ;;  %v1050_v33 = vsel %vm1042_vm5, %v1033_v9, %v2706_v28 }
 0x15c   : > { %v938_v50 = vpop.permute.xlu1 %937 }
 0x15d   : > { %v922_v45 = vpop.permute.xlu0 %921  ;;  %v1124_v39 = vsel %vm1110_vm9, %v1107_v30, %v938_v50 }
 0x15e   : > { %v1116_v35 = vsel %vm1110_vm9, %v1099_v41, %v922_v45 }
 0x160   : > { %v985_v15 = vpop.permute.xlu1 %984 }
 0x161   : > { %v1140_v29 = vsel %vm1127_vm10, %v1123_v62, %v985_v15  ;;  %v969_v24 = vpop.permute.xlu0 %968 }
 0x162   : > { %1157 = vst.msk [vmem:[#allocation2 + $0x60] sm:$0xff] %vm1144_vm11, %v1140_v29  ;;  %v1132_v36 = vsel %vm1127_vm10, %v1115_v11, %v969_v24 }
 0x163   : > { %1149 = vst.msk [vmem:[#allocation2 + $0x20] sm:$0xff] %vm1144_vm11, %v1132_v36 }
 0x164   : > { %v796_v57 = vpop.permute.xlu1 %795 }
 0x165   : > { %v780_v0 = vpop.permute.xlu0 %779  ;;  %v1075_v1 = vsel %vm1059_vm6, %v1058_v5, %v796_v57 }
 0x166   : > { %v1067_v60 = vsel %vm1059_vm6, %v1050_v33, %v780_v0 }
 0x168   : > { %v843_v10 = vpop.permute.xlu1 %842 }
 0x169   : > { %v1173_v48 = vld [vmem:[#allocation2 + $0x60] sm:$0xff]  ;;  %v827_v13 = vpop.permute.xlu0 %826  ;;  %v1091_v43 = vsel %vm1076_vm7, %v1074_v8, %v843_v10 }
 0x16a   : > { %1827 = vmatprep.mubr.msk.f32.mxu1 %vm1144_vm11, %v1173_v48  ;;  %v1165_v34 = vld [vmem:[#allocation2 + $0x20] sm:$0xff]  ;;  %v1083_v6 = vsel %vm1076_vm7, %v1066_v4, %v827_v13 }
 0x16b   : > { %1815 = vmatprep.mubr.msk.f32.mxu0 %vm1144_vm11, %v1165_v34  ;;  %v2784_v10 = vld [vmem:[%s2844_s4] ss:$0 sm:$0xff] }
 0x16c   : > { %v987_v37 = vpop.permute.xlu1 %986 }
 0x16d   : > { %v1141_v40 = vsel %vm1127_vm10, %v1124_v39, %v987_v37  ;;  %v971_v53 = vpop.permute.xlu0 %970 }
 0x16e   : > { %1158 = vst.msk [vmem:[#allocation2 + $0x68] sm:$0xff] %vm1144_vm11, %v1141_v40  ;;  %v1133_v38 = vsel %vm1127_vm10, %v1116_v35, %v971_v53 }
 0x16f   : > { %1150 = vst.msk [vmem:[#allocation2 + $0x28] sm:$0xff] %vm1144_vm11, %v1133_v38 }
 0x170   : > { %v845_v63 = vpop.permute.xlu1 %844 }
 0x171   : > { %v829_v32 = vpop.permute.xlu0 %828  ;;  %v1092_v2 = vsel %vm1076_vm7, %v1075_v1, %v845_v63 }
 0x172   : > { %v1084_v52 = vsel %vm1076_vm7, %v1067_v60, %v829_v32 }
 0x174   : > { %v892_v42 = vpop.permute.xlu1 %891 }
 0x175   : > { %v1174_v54 = vld [vmem:[#allocation2 + $0x68] sm:$0xff]  ;;  %v876_v44 = vpop.permute.xlu0 %875  ;;  %v1108_v49 = vsel %vm1093_vm8, %v1091_v43, %v892_v42 }
 0x176   : > { %1828 = vmatmul.mubr.msk.f32.gmra.mrb[4].mxu1 %vm1144_vm11, %v1174_v54  ;;  %v1166_v17 = vld [vmem:[#allocation2 + $0x28] sm:$0xff]  ;;  %v1100_v12 = vsel %vm1093_vm8, %v1083_v6, %v876_v44 }
 0x177   : > { %1816 = vmatmul.mubr.msk.f32.gmra.mrb[4].mxu0 %vm1144_vm11, %v1166_v17 }
 0x178   : > { %v894_v27 = vpop.permute.xlu1 %893 }
 0x179   : > { %v878_v19 = vpop.permute.xlu0 %877  ;;  %v1109_v23 = vsel %vm1093_vm8, %v1092_v2, %v894_v27 }
 0x17a   : > { %v1101_v62 = vsel %vm1093_vm8, %v1084_v52, %v878_v19 }
 0x17c   : > { %v940_v56 = vpop.permute.xlu1 %939 }
 0x17d   : > { %v924_v16 = vpop.permute.xlu0 %923  ;;  %v1125_v55 = vsel %vm1110_vm9, %v1108_v49, %v940_v56 }
 0x17e   : > { %v1117_v22 = vsel %vm1110_vm9, %v1100_v12, %v924_v16 }
 0x180   : > { %v942_v51 = vpop.permute.xlu1 %941 }
 0x181   : > { %v926_v18 = vpop.permute.xlu0 %925  ;;  %v1126_v47 = vsel %vm1110_vm9, %v1109_v23, %v942_v51 }
 0x182   : > { %v1118_v20 = vsel %vm1110_vm9, %v1101_v62, %v926_v18 }
 0x184   : > { %v989_v31 = vpop.permute.xlu1 %988 }
 0x185   : > { %v1142_v7 = vsel %vm1127_vm10, %v1125_v55, %v989_v31  ;;  %v973_v50 = vpop.permute.xlu0 %972 }
 0x186   : > { %1159 = vst.msk [vmem:[#allocation2 + $0x70] sm:$0xff] %vm1144_vm11, %v1142_v7  ;;  %v1134_v45 = vsel %vm1127_vm10, %v1117_v22, %v973_v50 }
 0x187   : > { %1151 = vst.msk [vmem:[#allocation2 + $0x30] sm:$0xff] %vm1144_vm11, %v1134_v45 }
 0x188   : > { %v991_v28 = vpop.permute.xlu1 %990 }
 0x189   : > { %v1143_v15 = vsel %vm1127_vm10, %v1126_v47, %v991_v28  ;;  %v975_v29 = vpop.permute.xlu0 %974 }
 0x18a   : > { %1160 = vst.msk [vmem:[#allocation2 + $0x78] sm:$0xff] %vm1144_vm11, %v1143_v15  ;;  %v1135_v11 = vsel %vm1127_vm10, %v1118_v20, %v975_v29 }
 0x18b   : > { %1152 = vst.msk [vmem:[#allocation2 + $0x38] sm:$0xff] %vm1144_vm11, %v1135_v11 }
 0x18d   : > { %v1175_v24 = vld [vmem:[#allocation2 + $0x70] sm:$0xff] }
 0x18e   : > { %1830 = vmatprep.mubr.msk.f32.mxu1 %vm1144_vm11, %v1175_v24  ;;  %v1167_v36 = vld [vmem:[#allocation2 + $0x30] sm:$0xff] }
 0x18f   : > { %1818 = vmatprep.mubr.msk.f32.mxu0 %vm1144_vm11, %v1167_v36 }
 0x191   : > { %v1176_v57 = vld [vmem:[#allocation2 + $0x78] sm:$0xff] }
 0x192   : > { %1831 = vmatmul.mubr.msk.f32.gmra.mrb[6].mxu1 %vm1144_vm11, %v1176_v57  ;;  %v1168_v0 = vld [vmem:[#allocation2 + $0x38] sm:$0xff] }
 0x193   : > { %1819 = vmatmul.mubr.msk.f32.gmra.mrb[6].mxu0 %vm1144_vm11, %v1168_v0 }
 0x1cd   : > { %v1823_v48 = vpop.f32.mrb[0].mxu1 }
 0x1ce   : > { %v1354_v21 = vadd.f32 %v1823_v48, %v2784_v10  ;;  %v1348_v13 = vpop.f32.mrb[1].mxu1  ;;  %v1811_v30 = vpop.f32.mrb[0].mxu0 }
 0x1cf   : > { %v1349_v34 = vadd.f32 %v2784_v10, %v1348_v13  ;;  %v1314_v58 = vadd.f32 %v1811_v30, %v2784_v10  ;;  %v1308_v37 = vpop.f32.mrb[1].mxu0 }
 0x1d0   : > { %v1761_v39 = vmul.f32 -1.442695, %v1354_v21  ;;  %v1309_v41 = vadd.f32 %v2784_v10, %v1308_v37 }
 0x1d1   : > { %v1760_v40 = vmul.f32 -1.442695, %v1349_v34  ;;  %v1753_v35 = vmul.f32 -1.442695, %v1314_v58 }
 0x1d2   : > { %1907 = vpow2.f32 %v1761_v39  ;;  %v1752_v53 = vmul.f32 -1.442695, %v1309_v41 }
 0x1d3   : > { %1909 = vpow2.f32 %v1760_v40 }
 0x1d4   : > { %1911 = vpow2.f32 %v1753_v35 }
 0x1d5   : > { %1913 = vpow2.f32 %v1752_v53 }
 0x1dc   : > { %v1908_v38 = vpop.eup %1907 }
 0x1dd   : > { %v1910_v63 = vpop.eup %1909  ;;  %v1444_v32 = vadd.f32 1.0, %v1908_v38 }
 0x1de   : > { %v1912_v42 = vpop.eup %1911  ;;  %v1443_v54 = vadd.f32 1.0, %v1910_v63 }
 0x1df   : > { %v1914_v44 = vpop.eup %1913  ;;  %v1436_v17 = vadd.f32 1.0, %v1912_v42  ;;  %1915 = vrcp.f32 %v1444_v32 }
 0x1e0   : > { %v1435_v27 = vadd.f32 1.0, %v1914_v44  ;;  %1917 = vrcp.f32 %v1443_v54 }
 0x1e1   : > { %1919 = vrcp.f32 %v1436_v17 }
 0x1e2   : > { %1921 = vrcp.f32 %v1435_v27 }
 0x1e9   : > { %v1916_v19 = vpop.eup %1915 }
 0x1ea   : > { %v1918_v56 = vpop.eup %1917  ;;  %v1492_v16 = vmul.f32 %v1916_v19, %v1354_v21 }
 0x1eb   : > { %v1920_v46 = vpop.eup %1919  ;;  %v1491_v51 = vmul.f32 %v1918_v56, %v1349_v34 }
 0x1ec   : > { %v1922_v8 = vpop.eup %1921  ;;  %v1484_v59 = vmul.f32 %v1920_v46, %v1314_v58  ;;  %1508 = vst [vmem:[%s2795_s26 + $0x48] sm:$0xff] %v1492_v16 }
 0x1ed   : > { %v1483_v61 = vmul.f32 %v1922_v8, %v1309_v41  ;;  %1507 = vst [vmem:[%s2795_s26 + $0x40] sm:$0xff] %v1491_v51 }
 0x1ee   : > { %1500 = vst [vmem:[%s2795_s26 + $0x8] sm:$0xff] %v1484_v59 }
 0x1ef   : > { %1499 = vst [vmem:[%s2795_s26] sm:$0xff] %v1483_v61 }
 0x20d   : > { %v1826_v3 = vpop.f32.mrb[2].mxu1 }
 0x20e   : > { %v1364_v43 = vadd.f32 %v1826_v3, %v2784_v10  ;;  %v1358_v18 = vpop.f32.mrb[3].mxu1  ;;  %v1814_v26 = vpop.f32.mrb[2].mxu0 }
 0x20f   : > { %v1359_v4 = vadd.f32 %v2784_v10, %v1358_v18  ;;  %v1324_v49 = vadd.f32 %v1814_v26, %v2784_v10  ;;  %v1318_v14 = vpop.f32.mrb[3].mxu0 }
 0x210   : > { %v1763_v25 = vmul.f32 -1.442695, %v1364_v43  ;;  %v1319_v5 = vadd.f32 %v2784_v10, %v1318_v14 }
 0x211   : > { %v1762_v6 = vmul.f32 -1.442695, %v1359_v4  ;;  %v1755_v55 = vmul.f32 -1.442695, %v1324_v49 }
 0x212   : > { %1923 = vpow2.f32 %v1763_v25  ;;  %v1754_v31 = vmul.f32 -1.442695, %v1319_v5 }
 0x213   : > { %1925 = vpow2.f32 %v1762_v6 }
 0x214   : > { %1927 = vpow2.f32 %v1755_v55 }
 0x215   : > { %1929 = vpow2.f32 %v1754_v31 }
 0x21c   : > { %v1924_v9 = vpop.eup %1923 }
 0x21d   : > { %v1926_v1 = vpop.eup %1925  ;;  %v1446_v12 = vadd.f32 1.0, %v1924_v9 }
 0x21e   : > { %v1928_v7 = vpop.eup %1927  ;;  %v1445_v33 = vadd.f32 1.0, %v1926_v1 }
 0x21f   : > { %v1930_v2 = vpop.eup %1929  ;;  %v1438_v22 = vadd.f32 1.0, %v1928_v7  ;;  %1931 = vrcp.f32 %v1446_v12 }
 0x220   : > { %v1437_v50 = vadd.f32 1.0, %v1930_v2  ;;  %1933 = vrcp.f32 %v1445_v33 }
 0x221   : > { %1935 = vrcp.f32 %v1438_v22 }
 0x222   : > { %1937 = vrcp.f32 %v1437_v50 }
 0x229   : > { %v1932_v60 = vpop.eup %1931 }
 0x22a   : > { %v1934_v23 = vpop.eup %1933  ;;  %v1494_v45 = vmul.f32 %v1932_v60, %v1364_v43 }
 0x22b   : > { %v1936_v52 = vpop.eup %1935  ;;  %v1493_v47 = vmul.f32 %v1934_v23, %v1359_v4 }
 0x22c   : > { %v1938_v28 = vpop.eup %1937  ;;  %v1486_v62 = vmul.f32 %v1936_v52, %v1324_v49  ;;  %1510 = vst [vmem:[%s2795_s26 + $0x58] sm:$0xff] %v1494_v45 }
 0x22d   : > { %v1485_v15 = vmul.f32 %v1938_v28, %v1319_v5  ;;  %1509 = vst [vmem:[%s2795_s26 + $0x50] sm:$0xff] %v1493_v47 }
 0x22e   : > { %1502 = vst [vmem:[%s2795_s26 + $0x18] sm:$0xff] %v1486_v62 }
 0x22f   : > { %1501 = vst [vmem:[%s2795_s26 + $0x10] sm:$0xff] %v1485_v15 }
 0x249   : > { %v1829_v20 = vpop.f32.mrb[4].mxu1 }
 0x24a   : > { %v1374_v29 = vadd.f32 %v1829_v20, %v2784_v10  ;;  %v1368_v11 = vpop.f32.mrb[5].mxu1  ;;  %v1817_v24 = vpop.f32.mrb[4].mxu0 }
 0x24b   : > { %v1369_v36 = vadd.f32 %v2784_v10, %v1368_v11  ;;  %v1334_v57 = vadd.f32 %v1817_v24, %v2784_v10  ;;  %v1328_v48 = vpop.f32.mrb[5].mxu0 }
 0x24c   : > { %v1765_v0 = vmul.f32 -1.442695, %v1374_v29  ;;  %v1329_v21 = vadd.f32 %v2784_v10, %v1328_v48 }
 0x24d   : > { %v1764_v13 = vmul.f32 -1.442695, %v1369_v36  ;;  %v1757_v30 = vmul.f32 -1.442695, %v1334_v57 }
 0x24e   : > { %1939 = vpow2.f32 %v1765_v0  ;;  %v1756_v34 = vmul.f32 -1.442695, %v1329_v21 }
 0x24f   : > { %1941 = vpow2.f32 %v1764_v13 }
 0x250   : > { %1943 = vpow2.f32 %v1757_v30 }
 0x251   : > { %1945 = vpow2.f32 %v1756_v34 }
 0x258   : > { %v1940_v58 = vpop.eup %1939 }
 0x259   : > { %v1942_v39 = vpop.eup %1941  ;;  %v1448_v37 = vadd.f32 1.0, %v1940_v58 }
 0x25a   : > { %v1944_v41 = vpop.eup %1943  ;;  %v1447_v40 = vadd.f32 1.0, %v1942_v39 }
 0x25b   : > { %v1946_v35 = vpop.eup %1945  ;;  %v1440_v53 = vadd.f32 1.0, %v1944_v41  ;;  %1947 = vrcp.f32 %v1448_v37 }
 0x25c   : > { %v1439_v38 = vadd.f32 1.0, %v1946_v35  ;;  %1949 = vrcp.f32 %v1447_v40 }
 0x25d   : > { %1951 = vrcp.f32 %v1440_v53 }
 0x25e   : > { %1953 = vrcp.f32 %v1439_v38 }
 0x265   : > { %v1948_v63 = vpop.eup %1947  ;;  %v1832_v32 = vpop.f32.mrb[6].mxu1 }
 0x266   : > { %v1950_v42 = vpop.eup %1949  ;;  %v1496_v54 = vmul.f32 %v1948_v63, %v1374_v29  ;;  %v1384_v44 = vadd.f32 %v1832_v32, %v2784_v10  ;;  %v1378_v17 = vpop.f32.mrb[7].mxu1 }
 0x267   : > { %v1952_v27 = vpop.eup %1951  ;;  %v1495_v19 = vmul.f32 %v1950_v42, %v1369_v36  ;;  %v1820_v56 = vpop.f32.mrb[6].mxu0  ;;  %v1379_v16 = vadd.f32 %v2784_v10, %v1378_v17 }
 0x268   : > { %v1954_v46 = vpop.eup %1953  ;;  %v1488_v51 = vmul.f32 %v1952_v27, %v1334_v57  ;;  %1512 = vst [vmem:[%s2795_s26 + $0x68] sm:$0xff] %v1496_v54  ;;  %v1344_v8 = vadd.f32 %v1820_v56, %v2784_v10  ;;  %v1767_v59 = vmul.f32 -1.442695, %v1384_v44  ;;  %v1338_v61 = vpop.f32.mrb[7].mxu0 }
 0x269   : > { %v1487_v3 = vmul.f32 %v1954_v46, %v1329_v21  ;;  %1511 = vst [vmem:[%s2795_s26 + $0x60] sm:$0xff] %v1495_v19  ;;  %v1339_v43 = vadd.f32 %v2784_v10, %v1338_v61  ;;  %v1766_v18 = vmul.f32 -1.442695, %v1379_v16 }
 0x26a   : > { %1504 = vst [vmem:[%s2795_s26 + $0x28] sm:$0xff] %v1488_v51  ;;  %v1759_v26 = vmul.f32 -1.442695, %v1344_v8  ;;  %1955 = vpow2.f32 %v1767_v59 }
 0x26b   : > { %1503 = vst [vmem:[%s2795_s26 + $0x20] sm:$0xff] %v1487_v3  ;;  %v1758_v4 = vmul.f32 -1.442695, %v1339_v43  ;;  %1957 = vpow2.f32 %v1766_v18 }
 0x26c   : > { %1959 = vpow2.f32 %v1759_v26 }
 0x26d   : > { %1961 = vpow2.f32 %v1758_v4 }
 0x274   : > { %v1956_v49 = vpop.eup %1955 }
 0x275   : > { %v1958_v25 = vpop.eup %1957  ;;  %v1450_v14 = vadd.f32 1.0, %v1956_v49 }
 0x276   : > { %v1960_v5 = vpop.eup %1959  ;;  %v1449_v6 = vadd.f32 1.0, %v1958_v25 }
 0x277   : > { %v1962_v55 = vpop.eup %1961  ;;  %v1442_v31 = vadd.f32 1.0, %v1960_v5  ;;  %1963 = vrcp.f32 %v1450_v14 }
 0x278   : > { %v1441_v10 = vadd.f32 1.0, %v1962_v55  ;;  %1965 = vrcp.f32 %v1449_v6 }
 0x279   : > { %1967 = vrcp.f32 %v1442_v31 }
 0x27a   : > { %1969 = vrcp.f32 %v1441_v10 }
 0x281   : > { %v1964_v9 = vpop.eup %1963 }
 0x282   : > { %v1966_v1 = vpop.eup %1965  ;;  %v1498_v12 = vmul.f32 %v1964_v9, %v1384_v44 }
 0x283   : > { %v1968_v7 = vpop.eup %1967  ;;  %v1497_v33 = vmul.f32 %v1966_v1, %v1379_v16 }
 0x284   : > { %v1970_v2 = vpop.eup %1969  ;;  %v1490_v22 = vmul.f32 %v1968_v7, %v1344_v8  ;;  %1514 = vst [vmem:[%s2795_s26 + $0x78] sm:$0xff] %v1498_v12 }
 0x285   : > { %v1489_v50 = vmul.f32 %v1970_v2, %v1339_v43  ;;  %1513 = vst [vmem:[%s2795_s26 + $0x70] sm:$0xff] %v1497_v33 }
 0x286   : > { %1506 = vst [vmem:[%s2795_s26 + $0x38] sm:$0xff] %v1490_v22 }
 0x287   : > { %1505 = vst [vmem:[%s2795_s26 + $0x30] sm:$0xff] %v1489_v50 }
 0x288 PF: > { %s15_s22 = sadd.s32 1, %s2009_s22   ;;  %s2887_s18 = smov %s2001_s20 }
 0x289   : > { %p12_p12 = scmp.ge.s32.totalorder %s15_s22, 6   ;;  %s2888_s19 = smov %s2005_s21 }
 0x28a   : > { %s2889_s20 = smov %s2892_s23  ;;  %s2890_s21 = smov %s2896_s24 }
 0x28b   :  { %14 = sbr.rel (!%p12_p12) target bundleno = 3 (0x3), region = 86 }

</bundles_post_ra>
